<compile_context>
chip_gen: v7x
topology: tpu7x:2x2x1
jax: 0.10.0
libtpu: 0.0.40
codegen_flags: <defaults>
</compile_context>

<pallas_src>
import functools

import jax
import jax.numpy as jnp
from jax import lax
from jax.experimental import pallas as pl
from jax.experimental.pallas import tpu as pltpu


def _column_index(n_pix, w):
    """(n_pix, 1) int32 column index of each flat pixel (pixel p -> p mod W)."""
    pix = lax.broadcasted_iota(jnp.int32, (n_pix, 1), 0)
    if (w & (w - 1)) == 0:                       # power-of-two W: no vector division
        return jnp.bitwise_and(pix, w - 1)
    return jnp.remainder(pix, w)


def _conv3x3(a, w_ref, *, W, n_out_rows):
    """3x3 / stride-1 convolution over a flat (R_in*W, C) f32 activation.

    `a` carries a 1-row halo on each side of the `n_out_rows` output rows
    (R_in = n_out_rows + 2); halo rows lying outside the image must already be zero.
    Returns the (n_out_rows*W, C) f32 conv result (no bias).
    w_ref: (3, 3*C, C) bf16 -- slab ky holds kernel row ky, rows ordered (kx, cin).
    """
    p_in, c = a.shape
    m = n_out_rows * W
    col = _column_index(p_in, W)

    # Column-shifted taps (ox = -1, 0, +1): one roll + one mask each, cast to bf16 once.
    # (Roll/mask kept in f32 before the cast -- safe on v5e which has no bf16 VPU path.)
    left = jnp.where(col >= 1, pltpu.roll(a, shift=1, axis=0), 0.0)           # a[p-1]
    right = jnp.where(col <= W - 2, pltpu.roll(a, shift=p_in - 1, axis=0), 0.0)  # a[p+1]
    taps = (left.astype(jnp.bfloat16),
            a.astype(jnp.bfloat16),
            right.astype(jnp.bfloat16))

    acc = None
    for ky in range(3):                          # dy = ky - 1; row shift = static slice
        off = ky * W
        patch = jnp.concatenate([t[off:off + m] for t in taps], axis=-1)   # (m, 3C) bf16
        part = jnp.dot(patch, w_ref[ky], preferred_element_type=jnp.float32)
        acc = part if acc is None else acc + part                          # f32 accumulate
    return acc


def _resblock_kernel(xa_ref, xb_ref, w1_ref, b1_ref, w2_ref, b2_ref, o_ref, *, W, TH):
    """One (batch, row-tile) step of ResidualBlock_noBN.

    xa_ref : (1, TH*W, C) f32  padded-image rows [t*TH, t*TH+TH)
    xb_ref : (1, 4*W,  C) f32  padded-image rows [t*TH+TH, t*TH+TH+4)
             (together: real rows [t*TH-2, (t+1)*TH+2), zero rows outside the image)
    w*_ref : (3, 3*C, C) bf16  3x3 weights as per-dy K=3C slabs
    b*_ref : (1, C) f32
    o_ref  : (1, TH*W, C) f32  output rows [t*TH, (t+1)*TH)
    """
    t = pl.program_id(1)
    n_tiles = pl.num_programs(1)

    # relu(x) for the tile + 2-row halo.  Padding rows hold x == 0, so relu keeps them 0,
    # which is exactly conv1's zero padding at the image boundary.
    rx = jnp.concatenate([jnp.maximum(xa_ref[0], 0.0),
                          jnp.maximum(xb_ref[0], 0.0)], axis=0)      # ((TH+4)*W, C) f32

    # conv1 over the tile rows + a 1-row halo -> f1 has TH+2 rows.
    h1 = _conv3x3(rx, w1_ref, W=W, n_out_rows=TH + 2)
    f1 = jnp.maximum(h1 + b1_ref[...], 0.0)

    # f1 halo rows lying outside the real image must be zero (conv2's zero padding), not
    # relu(conv1(zero padding) + bias).  Only the first row of the first tile and the last
    # row of the last tile can be outside.
    m1 = (TH + 2) * W
    pix = lax.broadcasted_iota(jnp.int32, (m1, 1), 0)
    lo = jnp.where(t == 0, W, 0)
    hi = jnp.where(t == n_tiles - 1, m1 - W, m1)
    f1 = jnp.where(jnp.logical_and(pix >= lo, pix < hi), f1, 0.0)

    # conv2 over f1's interior TH rows.
    h2 = _conv3x3(f1, w2_ref, W=W, n_out_rows=TH)

    # `identity` aliases relu(x) because of the in-place ReLU in the PyTorch module;
    # the tile's central TH rows of rx are that identity.
    o_ref[0] = (rx[2 * W:(TH + 2) * W] + h2 + b2_ref[...]).astype(o_ref.dtype)


def prepare_params(w1_oihw, b1, w2_oihw, b2):
    """One-time repack of PyTorch-layout conv params into the kernel layout."""
    C = w1_oihw.shape[0]

    def pack_w(w):
        # OIHW (Cout, Cin, 3, 3) -> (ky, kx, Cin, Cout) -> (3, 3*Cin, Cout) bf16 slabs.
        return jnp.transpose(w, (2, 3, 1, 0)).reshape(3, 3 * C, C).astype(jnp.bfloat16)

    def pack_b(b):
        return b.reshape(1, C).astype(jnp.float32)

    return pack_w(w1_oihw), pack_b(b1), pack_w(w2_oihw), pack_b(b2)


def _pick_tile_h(h, tile_h):
    for cand in range(min(tile_h, h), 3, -1):
        if h % cand == 0 and cand % 4 == 0:
            return cand
    raise ValueError(f"no valid row tile for H={h} (need H % 4 == 0)")


def _vmem_limit_bytes(TH, W, C):
    """Per-step VMEM footprint estimate (double-buffered I/O + temporaries) with headroom.
    Review guidance: ~48-56 MiB for TH=64 at 256x256x64 (fits v7x's 64 MiB/TC);
    32 MiB floor at small shapes (>= every generation's default scoped limit)."""
    f32, bf16 = 4, 2
    p_in, p_f1, p_out = (TH + 4) * W, (TH + 2) * W, TH * W
    est = (2 * (p_out + 4 * W) * C * f32          # x blocks, double-buffered
           + 2 * p_out * C * f32                  # output block, double-buffered
           + 2 * 2 * 9 * C * C * bf16             # both weight sets (+ spare buffer)
           + p_in * C * f32                       # relu(x) tile (with halo)
           + 3 * p_in * C * bf16                  # column-shifted bf16 taps
           + p_f1 * C * f32                       # f1
           + 2 * p_f1 * 3 * C * bf16              # (M, 3C) im2col operand(s)
           + 2 * p_f1 * C * f32)                  # f32 accumulators
    est = int(est * 1.2)
    return min(56 * 2**20, max(32 * 2**20, est))


def residual_block_nobn_nhwc(x_nhwc, params, *, tile_h=64):
    """Channels-last forward: (N, H, W, C) f32 -> (N, H, W, C) f32.

    tile_h: target row-tile height.  64 suits v7x (64 MiB VMEM / TensorCore) at
    256x256x64; v5e/v6e (128 MiB VMEM) can use tile_h=128.
    """
    N, H, W, C = x_nhwc.shape
    if H % 4 != 0 or W % 2 != 0:
        raise ValueError("row tiling requires H % 4 == 0 and even W")
    w1, b1, w2, b2 = params
    TH = _pick_tile_h(H, tile_h)

    # 2 zero halo rows top and bottom (relu(0) == 0 == conv zero padding), then flatten
    # pixels so every Ref inside the kernel is a simple (pixels, C) slab.
    x_pad = jnp.pad(x_nhwc, ((0, 0), (2, 2), (0, 0), (0, 0)))
    x_flat = x_pad.reshape(N, (H + 4) * W, C)

    y_flat = pl.pallas_call(
        functools.partial(_resblock_kernel, W=W, TH=TH),
        out_shape=jax.ShapeDtypeStruct((N, H * W, C), x_nhwc.dtype),
        grid_spec=pltpu.PrefetchScalarGridSpec(
            num_scalar_prefetch=0,
            grid=(N, H // TH),
            in_specs=[
                # padded rows [t*TH, t*TH + TH) ...
                pl.BlockSpec((1, TH * W, C), lambda n, t: (n, t, 0)),
                # ... plus padded rows [t*TH + TH, t*TH + TH + 4): together the tile's
                # TH real rows with a 2-row halo on each side.
                pl.BlockSpec((1, 4 * W, C), lambda n, t: (n, (t + 1) * (TH // 4), 0)),
                pl.BlockSpec((3, 3 * C, C), lambda n, t: (0, 0, 0)),   # w1 (resident)
                pl.BlockSpec((1, C), lambda n, t: (0, 0)),             # b1
                pl.BlockSpec((3, 3 * C, C), lambda n, t: (0, 0, 0)),   # w2 (resident)
                pl.BlockSpec((1, C), lambda n, t: (0, 0)),             # b2
            ],
            out_specs=pl.BlockSpec((1, TH * W, C), lambda n, t: (n, t, 0)),
        ),
        compiler_params=pltpu.CompilerParams(
            dimension_semantics=("parallel", "parallel"),   # megacore-splittable on v7x
            vmem_limit_bytes=_vmem_limit_bytes(TH, W, C),
        ),
    )(x_flat, x_flat, w1, b1, w2, b2)

    return y_flat.reshape(N, H, W, C)


@functools.partial(jax.jit, static_argnames=("tile_h",))
def residual_block_nobn(x_nchw, params, *, tile_h=64):
    """NCHW adapter matching the PyTorch module layout (prefer the NHWC entry point)."""
    x_nhwc = jnp.transpose(x_nchw, (0, 2, 3, 1))
    y_nhwc = residual_block_nobn_nhwc(x_nhwc, params, tile_h=tile_h)
    return jnp.transpose(y_nhwc, (0, 3, 1, 2))


def _reference(x, w1, b1, w2, b2, *, matmul_dtype):
    """Pure-JAX reference with PyTorch NCHW/OIHW semantics (in-place ReLU aliasing).
    matmul_dtype selects the conv operand precision; accumulation stays f32."""
    dn = ('NCHW', 'OIHW', 'NCHW')

    def conv(a, w):
        return lax.conv_general_dilated(
            a.astype(matmul_dtype), w.astype(matmul_dtype), (1, 1), ((1, 1), (1, 1)),
            dimension_numbers=dn, preferred_element_type=jnp.float32)

    rx = jnp.maximum(x, 0.0)
    f1 = jnp.maximum(conv(rx, w1) + b1[None, :, None, None], 0.0)
    f2 = conv(f1, w2) + b2[None, :, None, None]
    return rx + f2


if __name__ == "__main__":
    N, nf, H, W = 2, 64, 16, 16

    key = jax.random.PRNGKey(0)
    kx, kw1, kb1, kw2, kb2 = jax.random.split(key, 5)

    x = jax.random.normal(kx, (N, nf, H, W), dtype=jnp.float32)
    fan_in = nf * 9
    w1 = jax.random.normal(kw1, (nf, nf, 3, 3), dtype=jnp.float32) * fan_in ** -0.5
    b1 = jax.random.normal(kb1, (nf,), dtype=jnp.float32) * 0.01
    w2 = jax.random.normal(kw2, (nf, nf, 3, 3), dtype=jnp.float32) * fan_in ** -0.5
    b2 = jax.random.normal(kb2, (nf,), dtype=jnp.float32) * 0.01

    params = prepare_params(w1, b1, w2, b2)      # one-time weight repack (hoisted)

    y_bf = _reference(x, w1, b1, w2, b2, matmul_dtype=jnp.bfloat16)
    y_f32 = _reference(x, w1, b1, w2, b2, matmul_dtype=jnp.float32)

    # tile_h=8 -> two row tiles per image (exercises the halo / tile-boundary path);
    # tile_h=64 -> a single tile per image at this demo size.
    for tile_h in (8, 64):
        y = jax.block_until_ready(residual_block_nobn(x, params, tile_h=tile_h))
        assert y.shape == (N, nf, H, W)
        assert y.dtype == x.dtype
        # Tight check vs. a reference with identical bf16-operand / f32-accumulate numerics.
        err_bf = float(jnp.max(jnp.abs(y - y_bf)))
        assert err_bf < 2e-2, ("bf16-ref mismatch", tile_h, err_bf)
        # Loose sanity check vs. the full-f32 reference (bf16 quantization noise only).
        err_f32 = float(jnp.max(jnp.abs(y - y_f32)))
        assert err_f32 < 1e-1, ("f32-ref mismatch", tile_h, err_f32)

    print("KERNEL_OK")
</pallas_src>

<mosaic_0001>
module attributes {stable_mosaic.version = 11 : i64} {
  func.func @_resblock_kernel(%arg0: i32, %arg1: i32, %arg2: memref<1x128x64xf32, #tpu.memory_space<vmem>>, %arg3: memref<1x64x64xf32, #tpu.memory_space<vmem>>, %arg4: memref<3x192x64xbf16, #tpu.memory_space<vmem>>, %arg5: memref<1x64xf32, #tpu.memory_space<vmem>>, %arg6: memref<3x192x64xbf16, #tpu.memory_space<vmem>>, %arg7: memref<1x64xf32, #tpu.memory_space<vmem>>, %arg8: memref<1x128x64xf32, #tpu.memory_space<vmem>>) attributes {dimension_semantics = [#tpu.dimension_semantics<parallel>, #tpu.dimension_semantics<parallel>], iteration_bounds = array<i64: 2, 2>, scalar_prefetch = 0 : i64, scratch_operands = 0 : i64, tpu.core_type = #tpu.core_type<tc>, window_params = [{transform_indices = @transform_0, window_bounds = array<i64: 1, 128, 64>}, {transform_indices = @transform_1, window_bounds = array<i64: 1, 64, 64>}, {pipeline_mode = #tpu.pipeline_mode<synchronous>, transform_indices = @transform_2, window_bounds = array<i64: 3, 192, 64>}, {pipeline_mode = #tpu.pipeline_mode<synchronous>, transform_indices = @transform_3, window_bounds = array<i64: 1, 64>}, {pipeline_mode = #tpu.pipeline_mode<synchronous>, transform_indices = @transform_4, window_bounds = array<i64: 3, 192, 64>}, {pipeline_mode = #tpu.pipeline_mode<synchronous>, transform_indices = @transform_5, window_bounds = array<i64: 1, 64>}, {transform_indices = @transform_6, window_bounds = array<i64: 1, 128, 64>}]} {
    %c0 = arith.constant 0 : index
    %c0_0 = arith.constant 0 : index
    %c0_1 = arith.constant 0 : index
    %0 = vector.load %arg2[%c0, %c0_0, %c0_1] : memref<1x128x64xf32, #tpu.memory_space<vmem>>, vector<1x128x64xf32>
    %1 = vector.shape_cast %0 : vector<1x128x64xf32> to vector<128x64xf32>
    %cst = arith.constant 0.000000e+00 : f32
    %2 = vector.broadcast %cst : f32 to vector<128x64xf32>
    %3 = arith.maximumf %1, %2 : vector<128x64xf32>
    %c0_2 = arith.constant 0 : index
    %c0_3 = arith.constant 0 : index
    %c0_4 = arith.constant 0 : index
    %4 = vector.load %arg3[%c0_2, %c0_3, %c0_4] : memref<1x64x64xf32, #tpu.memory_space<vmem>>, vector<1x64x64xf32>
    %5 = vector.shape_cast %4 : vector<1x64x64xf32> to vector<64x64xf32>
    %cst_5 = arith.constant 0.000000e+00 : f32
    %6 = vector.broadcast %cst_5 : f32 to vector<64x64xf32>
    %7 = arith.maximumf %5, %6 : vector<64x64xf32>
    %8 = tpu.concatenate %3, %7 in 0 : vector<128x64xf32>, vector<64x64xf32> -> vector<192x64xf32>
    %9 = tpu.iota {dimensions = array<i32: 0>} : vector<192x1xi32>
    %c15_i32 = arith.constant 15 : i32
    %10 = vector.broadcast %c15_i32 : i32 to vector<192x1xi32>
    %11 = arith.andi %9, %10 : vector<192x1xi32>
    %c1_i32 = arith.constant 1 : i32
    %12 = vector.broadcast %c1_i32 : i32 to vector<192x1xi32>
    %13 = arith.cmpi sge, %11, %12 : vector<192x1xi32>
    %c1_i32_6 = arith.constant 1 : i32
    %14 = tpu.dynamic_rotate %8 by %c1_i32_6 dim 0 : vector<192x64xf32>, i32 -> vector<192x64xf32>
    %cst_7 = arith.constant 0.000000e+00 : f32
    %15 = vector.shape_cast %13 : vector<192x1xi1> to vector<192x1xi1>
    %16 = vector.broadcast %15 : vector<192x1xi1> to vector<192x64xi1>
    %17 = vector.broadcast %cst_7 : f32 to vector<192x64xf32>
    %18 = arith.select %16, %14, %17 : vector<192x64xi1>, vector<192x64xf32>
    %c14_i32 = arith.constant 14 : i32
    %19 = vector.broadcast %c14_i32 : i32 to vector<192x1xi32>
    %20 = arith.cmpi sle, %11, %19 : vector<192x1xi32>
    %c191_i32 = arith.constant 191 : i32
    %21 = tpu.dynamic_rotate %8 by %c191_i32 dim 0 : vector<192x64xf32>, i32 -> vector<192x64xf32>
    %cst_8 = arith.constant 0.000000e+00 : f32
    %22 = vector.shape_cast %20 : vector<192x1xi1> to vector<192x1xi1>
    %23 = vector.broadcast %22 : vector<192x1xi1> to vector<192x64xi1>
    %24 = vector.broadcast %cst_8 : f32 to vector<192x64xf32>
    %25 = arith.select %23, %21, %24 : vector<192x64xi1>, vector<192x64xf32>
    %26 = arith.truncf %18 : vector<192x64xf32> to vector<192x64xbf16>
    %27 = arith.truncf %8 : vector<192x64xf32> to vector<192x64xbf16>
    %28 = arith.truncf %25 : vector<192x64xf32> to vector<192x64xbf16>
    %29 = vector.extract_strided_slice %26 {offsets = [0, 0], sizes = [160, 64], strides = [1, 1]} : vector<192x64xbf16> to vector<160x64xbf16>
    %30 = vector.extract_strided_slice %27 {offsets = [0, 0], sizes = [160, 64], strides = [1, 1]} : vector<192x64xbf16> to vector<160x64xbf16>
    %31 = vector.extract_strided_slice %28 {offsets = [0, 0], sizes = [160, 64], strides = [1, 1]} : vector<192x64xbf16> to vector<160x64xbf16>
    %32 = tpu.concatenate %29, %30, %31 in 1 : vector<160x64xbf16>, vector<160x64xbf16>, vector<160x64xbf16> -> vector<160x192xbf16>
    %c0_9 = arith.constant 0 : index
    %c0_10 = arith.constant 0 : index
    %c0_11 = arith.constant 0 : index
    %33 = vector.load %arg4[%c0_9, %c0_10, %c0_11] : memref<3x192x64xbf16, #tpu.memory_space<vmem>>, vector<1x192x64xbf16>
    %34 = vector.shape_cast %33 : vector<1x192x64xbf16> to vector<192x64xbf16>
    %cst_12 = arith.constant dense<0.000000e+00> : vector<160x64xf32>
    %35 = tpu.matmul %32, %34, %cst_12 {dimension_numbers = #tpu.dot_dimension_numbers<[1], [0], [0], [1], [0, 0, 1, 1], [], []>} : vector<160x192xbf16>, vector<192x64xbf16>, vector<160x64xf32> -> vector<160x64xf32>
    %36 = vector.extract_strided_slice %26 {offsets = [16, 0], sizes = [160, 64], strides = [1, 1]} : vector<192x64xbf16> to vector<160x64xbf16>
    %37 = vector.extract_strided_slice %27 {offsets = [16, 0], sizes = [160, 64], strides = [1, 1]} : vector<192x64xbf16> to vector<160x64xbf16>
    %38 = vector.extract_strided_slice %28 {offsets = [16, 0], sizes = [160, 64], strides = [1, 1]} : vector<192x64xbf16> to vector<160x64xbf16>
    %39 = tpu.concatenate %36, %37, %38 in 1 : vector<160x64xbf16>, vector<160x64xbf16>, vector<160x64xbf16> -> vector<160x192xbf16>
    %c1 = arith.constant 1 : index
    %c0_13 = arith.constant 0 : index
    %c0_14 = arith.constant 0 : index
    %40 = vector.load %arg4[%c1, %c0_13, %c0_14] : memref<3x192x64xbf16, #tpu.memory_space<vmem>>, vector<1x192x64xbf16>
    %41 = vector.shape_cast %40 : vector<1x192x64xbf16> to vector<192x64xbf16>
    %cst_15 = arith.constant dense<0.000000e+00> : vector<160x64xf32>
    %42 = tpu.matmul %39, %41, %cst_15 {dimension_numbers = #tpu.dot_dimension_numbers<[1], [0], [0], [1], [0, 0, 1, 1], [], []>} : vector<160x192xbf16>, vector<192x64xbf16>, vector<160x64xf32> -> vector<160x64xf32>
    %43 = arith.addf %35, %42 : vector<160x64xf32>
    %44 = vector.extract_strided_slice %26 {offsets = [32, 0], sizes = [160, 64], strides = [1, 1]} : vector<192x64xbf16> to vector<160x64xbf16>
    %45 = vector.extract_strided_slice %27 {offsets = [32, 0], sizes = [160, 64], strides = [1, 1]} : vector<192x64xbf16> to vector<160x64xbf16>
    %46 = vector.extract_strided_slice %28 {offsets = [32, 0], sizes = [160, 64], strides = [1, 1]} : vector<192x64xbf16> to vector<160x64xbf16>
    %47 = tpu.concatenate %44, %45, %46 in 1 : vector<160x64xbf16>, vector<160x64xbf16>, vector<160x64xbf16> -> vector<160x192xbf16>
    %c2 = arith.constant 2 : index
    %c0_16 = arith.constant 0 : index
    %c0_17 = arith.constant 0 : index
    %48 = vector.load %arg4[%c2, %c0_16, %c0_17] : memref<3x192x64xbf16, #tpu.memory_space<vmem>>, vector<1x192x64xbf16>
    %49 = vector.shape_cast %48 : vector<1x192x64xbf16> to vector<192x64xbf16>
    %cst_18 = arith.constant dense<0.000000e+00> : vector<160x64xf32>
    %50 = tpu.matmul %47, %49, %cst_18 {dimension_numbers = #tpu.dot_dimension_numbers<[1], [0], [0], [1], [0, 0, 1, 1], [], []>} : vector<160x192xbf16>, vector<192x64xbf16>, vector<160x64xf32> -> vector<160x64xf32>
    %51 = arith.addf %43, %50 : vector<160x64xf32>
    %c0_19 = arith.constant 0 : index
    %c0_20 = arith.constant 0 : index
    %52 = vector.load %arg5[%c0_19, %c0_20] : memref<1x64xf32, #tpu.memory_space<vmem>>, vector<1x64xf32>
    %53 = vector.broadcast %52 : vector<1x64xf32> to vector<160x64xf32>
    %54 = arith.addf %51, %53 : vector<160x64xf32>
    %cst_21 = arith.constant 0.000000e+00 : f32
    %55 = vector.broadcast %cst_21 : f32 to vector<160x64xf32>
    %56 = arith.maximumf %54, %55 : vector<160x64xf32>
    %57 = tpu.iota {dimensions = array<i32: 0>} : vector<160x1xi32>
    %c0_i32 = arith.constant 0 : i32
    %58 = arith.cmpi eq, %arg1, %c0_i32 : i32
    %c16_i32 = arith.constant 16 : i32
    %c0_i32_22 = arith.constant 0 : i32
    %59 = arith.select %58, %c16_i32, %c0_i32_22 : i32
    %c1_i32_23 = arith.constant 1 : i32
    %60 = arith.cmpi eq, %arg1, %c1_i32_23 : i32
    %c144_i32 = arith.constant 144 : i32
    %c160_i32 = arith.constant 160 : i32
    %61 = arith.select %60, %c144_i32, %c160_i32 : i32
    %62 = vector.broadcast %59 : i32 to vector<160x1xi32>
    %63 = arith.cmpi sge, %57, %62 : vector<160x1xi32>
    %64 = vector.broadcast %61 : i32 to vector<160x1xi32>
    %65 = arith.cmpi slt, %57, %64 : vector<160x1xi32>
    %66 = arith.andi %63, %65 : vector<160x1xi1>
    %cst_24 = arith.constant 0.000000e+00 : f32
    %67 = vector.shape_cast %66 : vector<160x1xi1> to vector<160x1xi1>
    %68 = vector.broadcast %67 : vector<160x1xi1> to vector<160x64xi1>
    %69 = vector.broadcast %cst_24 : f32 to vector<160x64xf32>
    %70 = arith.select %68, %56, %69 : vector<160x64xi1>, vector<160x64xf32>
    %71 = tpu.iota {dimensions = array<i32: 0>} : vector<160x1xi32>
    %c15_i32_25 = arith.constant 15 : i32
    %72 = vector.broadcast %c15_i32_25 : i32 to vector<160x1xi32>
    %73 = arith.andi %71, %72 : vector<160x1xi32>
    %c1_i32_26 = arith.constant 1 : i32
    %74 = vector.broadcast %c1_i32_26 : i32 to vector<160x1xi32>
    %75 = arith.cmpi sge, %73, %74 : vector<160x1xi32>
    %c1_i32_27 = arith.constant 1 : i32
    %76 = tpu.dynamic_rotate %70 by %c1_i32_27 dim 0 : vector<160x64xf32>, i32 -> vector<160x64xf32>
    %cst_28 = arith.constant 0.000000e+00 : f32
    %77 = vector.shape_cast %75 : vector<160x1xi1> to vector<160x1xi1>
    %78 = vector.broadcast %77 : vector<160x1xi1> to vector<160x64xi1>
    %79 = vector.broadcast %cst_28 : f32 to vector<160x64xf32>
    %80 = arith.select %78, %76, %79 : vector<160x64xi1>, vector<160x64xf32>
    %c14_i32_29 = arith.constant 14 : i32
    %81 = vector.broadcast %c14_i32_29 : i32 to vector<160x1xi32>
    %82 = arith.cmpi sle, %73, %81 : vector<160x1xi32>
    %c159_i32 = arith.constant 159 : i32
    %83 = tpu.dynamic_rotate %70 by %c159_i32 dim 0 : vector<160x64xf32>, i32 -> vector<160x64xf32>
    %cst_30 = arith.constant 0.000000e+00 : f32
    %84 = vector.shape_cast %82 : vector<160x1xi1> to vector<160x1xi1>
    %85 = vector.broadcast %84 : vector<160x1xi1> to vector<160x64xi1>
    %86 = vector.broadcast %cst_30 : f32 to vector<160x64xf32>
    %87 = arith.select %85, %83, %86 : vector<160x64xi1>, vector<160x64xf32>
    %88 = arith.truncf %80 : vector<160x64xf32> to vector<160x64xbf16>
    %89 = arith.truncf %70 : vector<160x64xf32> to vector<160x64xbf16>
    %90 = arith.truncf %87 : vector<160x64xf32> to vector<160x64xbf16>
    %91 = vector.extract_strided_slice %88 {offsets = [0, 0], sizes = [128, 64], strides = [1, 1]} : vector<160x64xbf16> to vector<128x64xbf16>
    %92 = vector.extract_strided_slice %89 {offsets = [0, 0], sizes = [128, 64], strides = [1, 1]} : vector<160x64xbf16> to vector<128x64xbf16>
    %93 = vector.extract_strided_slice %90 {offsets = [0, 0], sizes = [128, 64], strides = [1, 1]} : vector<160x64xbf16> to vector<128x64xbf16>
    %94 = tpu.concatenate %91, %92, %93 in 1 : vector<128x64xbf16>, vector<128x64xbf16>, vector<128x64xbf16> -> vector<128x192xbf16>
    %c0_31 = arith.constant 0 : index
    %c0_32 = arith.constant 0 : index
    %c0_33 = arith.constant 0 : index
    %95 = vector.load %arg6[%c0_31, %c0_32, %c0_33] : memref<3x192x64xbf16, #tpu.memory_space<vmem>>, vector<1x192x64xbf16>
    %96 = vector.shape_cast %95 : vector<1x192x64xbf16> to vector<192x64xbf16>
    %cst_34 = arith.constant dense<0.000000e+00> : vector<128x64xf32>
    %97 = tpu.matmul %94, %96, %cst_34 {dimension_numbers = #tpu.dot_dimension_numbers<[1], [0], [0], [1], [0, 0, 1, 1], [], []>} : vector<128x192xbf16>, vector<192x64xbf16>, vector<128x64xf32> -> vector<128x64xf32>
    %98 = vector.extract_strided_slice %88 {offsets = [16, 0], sizes = [128, 64], strides = [1, 1]} : vector<160x64xbf16> to vector<128x64xbf16>
    %99 = vector.extract_strided_slice %89 {offsets = [16, 0], sizes = [128, 64], strides = [1, 1]} : vector<160x64xbf16> to vector<128x64xbf16>
    %100 = vector.extract_strided_slice %90 {offsets = [16, 0], sizes = [128, 64], strides = [1, 1]} : vector<160x64xbf16> to vector<128x64xbf16>
    %101 = tpu.concatenate %98, %99, %100 in 1 : vector<128x64xbf16>, vector<128x64xbf16>, vector<128x64xbf16> -> vector<128x192xbf16>
    %c1_35 = arith.constant 1 : index
    %c0_36 = arith.constant 0 : index
    %c0_37 = arith.constant 0 : index
    %102 = vector.load %arg6[%c1_35, %c0_36, %c0_37] : memref<3x192x64xbf16, #tpu.memory_space<vmem>>, vector<1x192x64xbf16>
    %103 = vector.shape_cast %102 : vector<1x192x64xbf16> to vector<192x64xbf16>
    %cst_38 = arith.constant dense<0.000000e+00> : vector<128x64xf32>
    %104 = tpu.matmul %101, %103, %cst_38 {dimension_numbers = #tpu.dot_dimension_numbers<[1], [0], [0], [1], [0, 0, 1, 1], [], []>} : vector<128x192xbf16>, vector<192x64xbf16>, vector<128x64xf32> -> vector<128x64xf32>
    %105 = arith.addf %97, %104 : vector<128x64xf32>
    %106 = vector.extract_strided_slice %88 {offsets = [32, 0], sizes = [128, 64], strides = [1, 1]} : vector<160x64xbf16> to vector<128x64xbf16>
    %107 = vector.extract_strided_slice %89 {offsets = [32, 0], sizes = [128, 64], strides = [1, 1]} : vector<160x64xbf16> to vector<128x64xbf16>
    %108 = vector.extract_strided_slice %90 {offsets = [32, 0], sizes = [128, 64], strides = [1, 1]} : vector<160x64xbf16> to vector<128x64xbf16>
    %109 = tpu.concatenate %106, %107, %108 in 1 : vector<128x64xbf16>, vector<128x64xbf16>, vector<128x64xbf16> -> vector<128x192xbf16>
    %c2_39 = arith.constant 2 : index
    %c0_40 = arith.constant 0 : index
    %c0_41 = arith.constant 0 : index
    %110 = vector.load %arg6[%c2_39, %c0_40, %c0_41] : memref<3x192x64xbf16, #tpu.memory_space<vmem>>, vector<1x192x64xbf16>
    %111 = vector.shape_cast %110 : vector<1x192x64xbf16> to vector<192x64xbf16>
    %cst_42 = arith.constant dense<0.000000e+00> : vector<128x64xf32>
    %112 = tpu.matmul %109, %111, %cst_42 {dimension_numbers = #tpu.dot_dimension_numbers<[1], [0], [0], [1], [0, 0, 1, 1], [], []>} : vector<128x192xbf16>, vector<192x64xbf16>, vector<128x64xf32> -> vector<128x64xf32>
    %113 = arith.addf %105, %112 : vector<128x64xf32>
    %114 = vector.extract_strided_slice %8 {offsets = [32, 0], sizes = [128, 64], strides = [1, 1]} : vector<192x64xf32> to vector<128x64xf32>
    %115 = arith.addf %114, %113 : vector<128x64xf32>
    %c0_43 = arith.constant 0 : index
    %c0_44 = arith.constant 0 : index
    %116 = vector.load %arg7[%c0_43, %c0_44] : memref<1x64xf32, #tpu.memory_space<vmem>>, vector<1x64xf32>
    %117 = vector.broadcast %116 : vector<1x64xf32> to vector<128x64xf32>
    %118 = arith.addf %115, %117 : vector<128x64xf32>
    %c0_45 = arith.constant 0 : index
    %c0_46 = arith.constant 0 : index
    %c0_47 = arith.constant 0 : index
    %119 = vector.load %arg8[%c0_45, %c0_46, %c0_47] : memref<1x128x64xf32, #tpu.memory_space<vmem>>, vector<1x128x64xf32>
    %120 = vector.shape_cast %119 : vector<1x128x64xf32> to vector<128x64xf32>
    %121 = vector.shape_cast %118 : vector<128x64xf32> to vector<1x128x64xf32>
    tpu.vector_store %arg8[%c0_45, %c0_46, %c0_47], %121 {strides = array<i32>} : memref<1x128x64xf32, #tpu.memory_space<vmem>>, vector<1x128x64xf32>,
    return
  }
  func.func @transform_0(%arg0: i32, %arg1: i32) -> (i32, i32, i32) {
    %c0_i32 = arith.constant 0 : i32
    %c0_i32_0 = arith.constant 0 : i32
    return %arg0, %arg1, %c0_i32 : i32, i32, i32
  }
  func.func @transform_1(%arg0: i32, %arg1: i32) -> (i32, i32, i32) {
    %c1_i32 = arith.constant 1 : i32
    %0 = arith.addi %arg1, %c1_i32 : i32
    %c2_i32 = arith.constant 2 : i32
    %1 = arith.muli %0, %c2_i32 : i32
    %c0_i32 = arith.constant 0 : i32
    %c0_i32_0 = arith.constant 0 : i32
    return %arg0, %1, %c0_i32 : i32, i32, i32
  }
  func.func @transform_2(%arg0: i32, %arg1: i32) -> (i32, i32, i32) {
    %c0_i32 = arith.constant 0 : i32
    %c0_i32_0 = arith.constant 0 : i32
    %c0_i32_1 = arith.constant 0 : i32
    %c0_i32_2 = arith.constant 0 : i32
    return %c0_i32, %c0_i32_0, %c0_i32_1 : i32, i32, i32
  }
  func.func @transform_3(%arg0: i32, %arg1: i32) -> (i32, i32) {
    %c0_i32 = arith.constant 0 : i32
    %c0_i32_0 = arith.constant 0 : i32
    %c0_i32_1 = arith.constant 0 : i32
    return %c0_i32, %c0_i32_0 : i32, i32
  }
  func.func @transform_4(%arg0: i32, %arg1: i32) -> (i32, i32, i32) {
    %c0_i32 = arith.constant 0 : i32
    %c0_i32_0 = arith.constant 0 : i32
    %c0_i32_1 = arith.constant 0 : i32
    %c0_i32_2 = arith.constant 0 : i32
    return %c0_i32, %c0_i32_0, %c0_i32_1 : i32, i32, i32
  }
  func.func @transform_5(%arg0: i32, %arg1: i32) -> (i32, i32) {
    %c0_i32 = arith.constant 0 : i32
    %c0_i32_0 = arith.constant 0 : i32
    %c0_i32_1 = arith.constant 0 : i32
    return %c0_i32, %c0_i32_0 : i32, i32
  }
  func.func @transform_6(%arg0: i32, %arg1: i32) -> (i32, i32, i32) {
    %c0_i32 = arith.constant 0 : i32
    %c0_i32_0 = arith.constant 0 : i32
    return %arg0, %arg1, %c0_i32 : i32, i32, i32
  }
}

</mosaic_0001>

<bundles_post_ra>
// kernel: residual_block_nobn.1
= control target key start
LH: loop header
LB: loop body
LE: loop exit
PB: predicated region body
PF: predicated region fallthrough
CT: control target
= control target key end

     0   :  { %11 = vsyncpa [#allocation3], 0  ;;  %s5157_s0 = inlined_call_operand.vmem [shape: f32[2,320,64], index: 0, kind: input, shape index: {}, may-alias: {0,1}]   ;;  %s5158_s1 = inlined_call_operand.vmem [shape: f32[2,320,64], index: 1, kind: input, shape index: {}, may-alias: {0,1}]   ;;  %s5159_s2 = inlined_call_operand.vmem [shape: bf16[3,192,64], index: 2, kind: input, shape index: {}]   ;;  %s5160_s3 = inlined_call_operand.vmem [shape: f32[1,64], index: 3, kind: input, shape index: {}]   ;;  %s5161_s4 = inlined_call_operand.vmem [shape: bf16[3,192,64], index: 4, kind: input, shape index: {}]   ;;  %s5162_s5 = inlined_call_operand.vmem [shape: f32[1,64], index: 5, kind: input, shape index: {}]   ;;  %s5163_s6 = inlined_call_operand.hbm [shape: f32[2,256,64], index: 6, kind: output, shape index: {}]  }
   0x1   :  { %13 = vsyncpa [#allocation3 + $0x1], 0  ;;  %s3299_s21 = smov 0   ;;  %s3301_s22 = smov 0  }
   0x2   :  { %s3303_s23 = smov 0   ;;  %s3305_s24 = smov 0  }
   0x3   :  { %s3307_s25 = smov 0   ;;  %s3309_s26 = smov 0  }
   0x4   :  { %s3311_s27 = smov 0   ;;  %s3313_s28 = smov 0  }
   0x5 LB: > { %5230 = sst [smem:[#allocation5_spill]] %s3253_s27  ;;  %s2736_s29 = sadd.s32 4294967295, %s3257_s28   ;;  %s3257_s28 = sphi %s3313_s28, %s19_s28   ;;  %s3253_s27 = sphi %s3311_s27, %s5509_s27   ;;  %s3249_s26 = sphi %s3309_s26, %s5514_s26   ;;  %s3245_s25 = sphi %s3307_s25, %s5507_s25   ;;  %s3241_s24 = sphi %s3305_s24, %s5513_s24   ;;  %s3237_s23 = sphi %s3303_s23, %s5512_s23   ;;  %s3233_s22 = sphi %s3301_s22, %s5511_s22   ;;  %s3229_s21 = sphi %s3299_s21, %s5510_s21  }
   0x6   : > { %s2737_s30 = sadd.s32 4294967294, %s3257_s28   ;;  %s28_s7 = sadd.s32 1, %s3249_s26 }
   0x7   : > { %p29_p0 = scmp.ge.s32.totalorder %s28_s7, 2  ;;  %s31_s8 = sadd.s32 1, %s3253_s27 }
   0x8   : > { %p194_p1 = scmp.ne.s32.totalorder %s3237_s23, %s3233_s22  ;;  %p195_p2 = scmp.eq.s32.totalorder %s2736_s29, 3 }
   0x9   : > { %s5516_s7 = smov (%p29_p0, %s28_s7), 0  ;;  %s5518_s8 = smov (!%p29_p0, %s31_s8), %s3253_s27 }
   0xa   : > { %5231 = sst [smem:[#allocation6_spill]] %s5516_s7  ;;  %s180_s9 = ssub.s32 %s3249_s26, %s5516_s7 }
   0xb   : > { %p3350_p3 = por %p195_p2, %p194_p1  ;;  %p33_p4 = scmp.ge.s32.totalorder %s5518_s8, 2 }
   0xc   : > { %p200_p5 = scmp.ne.s32.totalorder %s3233_s22, %s3229_s21  ;;  %p201_p6 = scmp.eq.s32.totalorder %s2737_s30, 3 }
   0xd   : > { %p2742_p7 = scmp.ge.s32.totalorder %s3257_s28, 1  ;;  %s5520_s8 = smov (%p33_p4, %s5518_s8), 0 }
   0xe   : > { %5233 = sst [smem:[#allocation7_spill]] %s5520_s8  ;;  %p3359_p8 = por %p201_p6, %p200_p5 }
   0xf   : > { %p269_p9 = scmp.lt.s32.totalorder %s3257_s28, 5  ;;  %s179_s12 = ssub.s32 %s3253_s27, %s5520_s8 }
  0x10   : > { %s184_s13 = sadd.s32 1, %s3237_s23  ;;  %s181_s14 = sor.u32 %s180_s9, %s179_s12 }
  0x11   : > { %p270_p10 = pnand %p2742_p7, %p269_p9  ;;  %p182_p11 = scmp.eq.s32.totalorder %s181_s14, 0 }
  0x13   : > { %s3368_s15 = scalar_select %p182_p11, %s3237_s23, %s184_s13  }
  0x14   : > { %273 = sbr.rel (%p270_p10) target bundleno = 947 (0x3b3), region = 44 }
  0x1b   : > { %s3371_s16 = sshll.u32 %s3241_s24, 4  ;;  %p323_p12 = scmp.lt.s32.totalorder %s3245_s25, 1  ;;  %v3088_v0 = vld [vmem:[%s5159_s2 + $0x60] sm:$0xff]   ;;  %v5171_v1 = vmov 0   ;;  %v3089_v2 = vld [vmem:[%s5159_s2 + $0x68] sm:$0xff]   ;;  %v3090_v3 = vld [vmem:[%s5159_s2 + $0x70] sm:$0xff]   ;;  %v400_v7 = vlaneseq }
  0x1c   : > { %p325_p13 = scmp.lt.s32.totalorder %s3371_s16, 39  ;;  %1004 = vmatprep.subr.bf16.mxu0 %v5171_v1  ;;  %1192 = vmatprep.subr.bf16.mxu1 %v5171_v1  ;;  %s2987_s12 = sadd.s32 16, %s3371_s16  ;;  %v3094_v4 = vld [vmem:[%s5159_s2] sm:$0xff]   ;;  %v3091_v5 = vld [vmem:[%s5159_s2 + $0x78] sm:$0xff]   ;;  %v3096_v6 = vld [vmem:[%s5159_s2 + $0x8] sm:$0xff]   ;;  %vm5189_vm0 = vcmask 523264  }
  0x1d   : > { %s3381_s19 = scalar_select %p323_p12, %s3245_s25, 1  ;;  %1005 = vmatpush1.bf16.msra.mxu0 %v3088_v0  ;;  %1193 = vmatpush1.bf16.msra.mxu1 %v3094_v4  ;;  %v3443_v23 = vshrl.u32 %v400_v7, 7  ;;  %v3092_v30 = vld [vmem:[%s5159_s2 + $0x80] sm:$0xff]   ;;  %v3093_v53 = vld [vmem:[%s5159_s2 + $0x88] sm:$0xff]   ;;  %v3098_v60 = vld [vmem:[%s5159_s2 + $0x10] sm:$0xff]  }
  0x1e   : > { %s326_s30 = scalar_select %p325_p13, %s3371_s16, 39  ;;  %1006 = vmatprep.subr.bf16.mxu0 %v5171_v1  ;;  %1194 = vmatprep.subr.bf16.mxu1 %v5171_v1  ;;  %v3095_v0 = vld [vmem:[%s5159_s2 + $0x90] sm:$0xff]  }
  0x1f   : > { %s3012_s9 = smul.u32 40, %s3381_s19  ;;  %p3406_p0 = scmp.lt.s32.totalorder %s2987_s12, 39  ;;  %v3507_v54 = vadd.s32 24, %v3443_v23  ;;  %vm5190_vm1 = vcmp.lt.s32.totalorder %v3443_v23, 7  ;;  %vm5193_vm3 = vcmp.lt.s32.totalorder %v3443_v23, 1 }
  0x20   : > { %s3260_s20 = smov 64   ;;  %p1592_p1 = scmp.eq.s32.totalorder %s3241_s24, 0 }
  0x21   : > { %s328_s17 = sadd.s32 %s3012_s9, %s326_s30  ;;  %1007 = vmatpush1.bf16.msra.mxu0 %v3089_v2  ;;  %s5522_s12 = smov (!%p3406_p0, %s2987_s12), 39  ;;  %1195 = vmatpush1.bf16.msra.mxu1 %v3096_v6  ;;  %v428_v4 = vand.u32 15, %v3507_v54  ;;  %v3100_v6 = vld [vmem:[%s5159_s2 + $0x18] sm:$0xff]  }
  0x22   : > { %s2745_s7 = sshll.u32 %s328_s17, 3  ;;  %1008 = vmatprep.subr.bf16.mxu0 %v5171_v1  ;;  %1196 = vmatprep.subr.bf16.mxu1 %v5171_v1  ;;  %s344_s29 = sadd.s32 %s3012_s9, %s5522_s12 }
  0x23   : > { %s3402_s27 = scalar_lea.vmem %s5157_s0, %s2745_s7  ;;  %s2748_s30 = sshll.u32 %s344_s29, 3  ;;  %vm3551_vm2 = vcmp.le.s32.totalorder %v428_v4, 14  ;;  %v3109_v4 = vld [vmem:[%s5159_s2 + $0x40] sm:$0xff]  }
  0x24   : > { %v354_v8 = vld [vmem:[%s3402_s27 + $0x10] sm:$0xff]  ;;  %v355_v9 = vld [vmem:[%s3402_s27 + $0x18] sm:$0xff]  ;;  %v356_v10 = vld [vmem:[%s3402_s27 + $0x20] sm:$0xff]  ;;  %s3481_s19 = scalar_lea.vmem %s5158_s1, %s2748_s30  ;;  %p1594_p2 = scmp.eq.s32.totalorder %s3241_s24, 1 }
  0x25   : > { %v3420_v11 = vmax.f32 %v354_v8, 0.0  ;;  %v3422_v12 = vmax.f32 %v355_v9, 0.0  ;;  %v357_v13 = vld [vmem:[%s3402_s27 + $0x28] sm:$0xff]  ;;  %v3425_v14 = vmax.f32 %v356_v10, 0.0  ;;  %v362_v15 = vld [vmem:[%s3402_s27 + $0x50] sm:$0xff]  ;;  %v363_v16 = vld [vmem:[%s3402_s27 + $0x58] sm:$0xff]  ;;  %1009 = vmatpush1.bf16.msra.mxu0 %v3090_v3  ;;  %1197 = vmatpush1.bf16.msra.mxu1 %v3098_v60 }
  0x26   : > { %v3429_v17 = vmax.f32 %v357_v13, 0.0  ;;  %v366_v18 = vld [vmem:[%s3402_s27 + $0x70] sm:$0xff]  ;;  %1010 = vmatprep.subr.bf16.mxu0 %v5171_v1  ;;  %v3436_v21 = vmax.f32 %v362_v15, 0.0  ;;  %v359_v22 = vld [vmem:[%s3402_s27 + $0x38] sm:$0xff]  ;;  %v3447_v26 = vmax.f32 %v363_v16, 0.0  ;;  %v360_v28 = vld [vmem:[%s3402_s27 + $0x40] sm:$0xff]  ;;  %1198 = vmatprep.subr.bf16.mxu1 %v5171_v1 }
  0x27   : > { %5236 = vst [vmem:[#allocation8_spill] sm:$0xff] %v3425_v14  ;;  %v358_v19 = vld [vmem:[%s3402_s27 + $0x30] sm:$0xff]  ;;  %v752_v20 = vpack.c.bf16 %v3422_v12, %v3420_v11  ;;  %v476_v24 = vrot.slane %v3422_v12, 7  ;;  %v475_v25 = vrot.slane %v3420_v11, 7  ;;  %v361_v29 = vld [vmem:[%s3402_s27 + $0x48] sm:$0xff]  ;;  %v367_v32 = vld [vmem:[%s3402_s27 + $0x78] sm:$0xff] }
  0x28   : > { %5237 = vst [vmem:[#allocation9_spill] sm:$0xff] %v3429_v17  ;;  %5238 = vst [vmem:[#allocation10_spill] sm:$0xff] %v3436_v21  ;;  %v3449_v27 = vmax.f32 %v358_v19, 0.0  ;;  %v753_v31 = vpack.c.bf16 %v3429_v17, %v3425_v14  ;;  %v3461_v33 = vmax.f32 %v366_v18, 0.0  ;;  %v3463_v34 = vmax.f32 %v359_v22, 0.0  ;;  %v352_v35 = vld [vmem:[%s3402_s27] sm:$0xff] }
  0x29   : > { %5239 = vst [vmem:[#allocation11_spill] sm:$0xff] %v3447_v26  ;;  %787 = vrot.lane.b32.xlu0 %v752_v20, %s3260_s20  ;;  %v353_v36 = vld [vmem:[%s3402_s27 + $0x8] sm:$0xff]  ;;  %v3469_v37 = vmax.f32 %v360_v28, 0.0  ;;  %1011 = vmatpush1.bf16.msra.mxu0 %v3091_v5  ;;  %v3471_v38 = vmax.f32 %v361_v29, 0.0  ;;  %v364_v39 = vld [vmem:[%s3402_s27 + $0x60] sm:$0xff]  ;;  %v756_v42 = vpack.c.bf16 %v3447_v26, %v3436_v21  ;;  %v3485_v43 = vmax.f32 %v367_v32, 0.0 }
  0x2a   : > { %5240 = vst [vmem:[#allocation12_spill] sm:$0xff] %v3449_v27  ;;  %5241 = vst [vmem:[#allocation13_spill] sm:$0xff] %v3461_v33  ;;  %v365_v40 = vld [vmem:[%s3402_s27 + $0x68] sm:$0xff]  ;;  %1012 = vmatprep.subr.bf16.mxu0 %v5171_v1  ;;  %v754_v41 = vpack.c.bf16 %v3463_v34, %v3449_v27  ;;  %v386_v44 = vld [vmem:[%s3481_s19 + $0x10] sm:$0xff]  ;;  %v3489_v46 = vmax.f32 %v352_v35, 0.0  ;;  %v3491_v47 = vmax.f32 %v353_v36, 0.0  ;;  %1199 = vmatpush1.bf16.msra.mxu1 %v3100_v6 }
  0x2b   : > { %5242 = vst [vmem:[#allocation14_spill] sm:$0xff] %v3463_v34  ;;  %5243 = vst [vmem:[#allocation15_spill] sm:$0xff] %v3469_v37  ;;  %v387_v45 = vld [vmem:[%s3481_s19 + $0x18] sm:$0xff]  ;;  %v384_v48 = vld [vmem:[%s3481_s19] sm:$0xff]  ;;  %v755_v49 = vpack.c.bf16 %v3471_v38, %v3469_v37  ;;  %v3498_v50 = vmax.f32 %v364_v39, 0.0  ;;  %v3500_v51 = vmax.f32 %v365_v40, 0.0  ;;  %v758_v61 = vpack.c.bf16 %v3485_v43, %v3461_v33  ;;  %1200 = vmatprep.subr.bf16.mxu1 %v5171_v1 }
  0x2c   : > { %5244 = vst [vmem:[#allocation16_spill] sm:$0xff] %v3471_v38  ;;  %5245 = vst [vmem:[#allocation17_spill] sm:$0xff] %v3485_v43  ;;  %791 = vrot.lane.b32.xlu1 %v754_v41, %s3260_s20  ;;  %v385_v52 = vld [vmem:[%s3481_s19 + $0x8] sm:$0xff]  ;;  %v3509_v55 = vmax.f32 %v386_v44, 0.0  ;;  %v3511_v56 = vmax.f32 %v387_v45, 0.0  ;;  %v620_v57 = vrot.slane %v3420_v11, 1  ;;  %v518_v32 = vsel %vm5193_vm3, %v475_v25, %v476_v24 }
  0x2d   : > { %789 = vrot.lane.b32.xlu0 %v753_v31, %s3260_s20  ;;  %5246 = vst [vmem:[#allocation18_spill] sm:$0xff] %v3498_v50  ;;  %5247 = vst [vmem:[#allocation19_spill] sm:$0xff] %v3500_v51  ;;  %1013 = vmatpush1.bf16.msra.mxu0 %v3092_v30  ;;  %v621_v58 = vrot.slane %v3422_v12, 1  ;;  %v3515_v59 = vmax.f32 %v384_v48, 0.0  ;;  %v3523_v62 = vmax.f32 %v385_v52, 0.0  ;;  %v388_v63 = vld [vmem:[%s3481_s19 + $0x20] sm:$0xff]  ;;  %v757_v2 = vpack.c.bf16 %v3500_v51, %v3498_v50 }
  0x2e   : > { %5248 = vst [vmem:[#allocation20_spill] sm:$0xff] %v3509_v55  ;;  %5249 = vst [vmem:[#allocation21_spill] sm:$0xff] %v3511_v56  ;;  %1014 = vmatprep.subr.bf16.mxu0 %v5171_v1  ;;  %v389_v3 = vld [vmem:[%s3481_s19 + $0x28] sm:$0xff]  ;;  %v622_v5 = vrot.slane %v3425_v14, 1  ;;  %v3545_v8 = vadd.s32 16, %v3443_v23  ;;  %v3547_v9 = vmax.f32 %v388_v63, 0.0  ;;  %v760_v15 = vpack.c.bf16 %v3511_v56, %v3509_v55 }
  0x2f   : > { %5250 = vst [vmem:[#allocation22_spill] sm:$0xff] %v3515_v59  ;;  %5251 = vst [vmem:[#allocation23_spill] sm:$0xff] %v3523_v62  ;;  %v663_v7 = vsel %vm5190_vm1, %v620_v57, %v621_v58  ;;  %v3561_v16 = vmax.f32 %v389_v3, 0.0  ;;  %v3097_v18 = vld [vmem:[%s5159_s2 + $0x98] sm:$0xff]   ;;  %v759_v20 = vpack.c.bf16 %v3523_v62, %v3515_v59  ;;  %v474_v29 = vrot.slane %v3491_v47, 7  ;;  %v3102_v30 = vld [vmem:[%s5159_s2 + $0x20] sm:$0xff]  }
  0x30   : > { %793 = vrot.lane.b32.xlu1 %v755_v49, %s3260_s20  ;;  %v662_v13 = vsel %vm5190_vm1, %v621_v58, %v622_v5  ;;  %v427_v28 = vand.u32 15, %v3545_v8  ;;  %v751_v39 = vpack.c.bf16 %v3491_v47, %v3489_v46  ;;  %1201 = vmatpush1.bf16.msra.mxu1 %v3102_v30  ;;  %v3101_v44 = vld [vmem:[%s5159_s2 + $0xa8] sm:$0xff]   ;;  %v3106_v45 = vld [vmem:[%s5159_s2 + $0x30] sm:$0xff]   ;;  %v3630_v49 = vadd.s32 8, %v3443_v23  ;;  %v3108_v52 = vld [vmem:[%s5159_s2 + $0x38] sm:$0xff]   ;;  %s315_s9 = sand.u32 1, %s3233_s22  }
  0x31   : > { %795 = vrot.lane.b32.xlu0 %v756_v42, %s3260_s20  ;;  %1015 = vmatpush1.bf16.msra.mxu0 %v3093_v53  ;;  %v718_v19 = vsel %vm3551_vm2, %v662_v13, 0.0  ;;  %v519_v35 = vsel %vm5193_vm3, %v474_v29, %v475_v25  ;;  %v761_v40 = vpack.c.bf16 %v3561_v16, %v3547_v9  ;;  %v3099_v25 = vld [vmem:[%s5159_s2 + $0xa0] sm:$0xff]   ;;  %v3104_v42 = vld [vmem:[%s5159_s2 + $0x28] sm:$0xff]   ;;  %v3103_v48 = vld [vmem:[%s5159_s2 + $0xb0] sm:$0xff]   ;;  %v5169_v53 = vrot.slane %v3489_v46, 1  ;;  %s2743_s12 = sshll.u32 %s315_s9, 7 }
  0x32   : > { %1016 = vmatprep.subr.bf16.mxu0 %v5171_v1  ;;  %v3572_v22 = vpack.c.bf16 %v718_v19, %v663_v7  ;;  %vm3582_vm4 = vcmp.ge.s32.totalorder %v427_v28, 1  ;;  %1202 = vmatprep.subr.bf16.mxu1 %v5171_v1  ;;  %v391_v58 = vld [vmem:[%s3481_s19 + $0x38] sm:$0xff]  ;;  %v426_v60 = vand.u32 15, %v3630_v49  ;;  %v473_v3 = vrot.slane %v3489_v46, 7  ;;  %s1593_s7 = scalar_select %p1592_p1, 16, 0 }
  0x33   : > { %v572_v36 = vsel %vm3582_vm4, %v519_v35, 0.0  ;;  %v3641_v63 = vmax.f32 %v391_v58, 0.0  ;;  %s1595_s17 = scalar_select %p1594_p2, 144, 160 }
  0x34   : > { %797 = vrot.lane.b32.xlu1 %v757_v2, %s3260_s20  ;;  %2785 = vmatprep.mubr.msk.bf16.mxu0 %vm5189_vm0, %v3572_v22  ;;  %v3609_v41 = vpack.c.bf16 %v518_v32, %v572_v36  ;;  %v425_v2 = vand.u32 15, %v3443_v23  ;;  %vm3651_vm5 = vcmp.le.s32.totalorder %v426_v60, 14  ;;  %v3112_v32 = vld [vmem:[%s5159_s2 + $0x50] sm:$0xff]   ;;  %v3114_v36 = vld [vmem:[%s5159_s2 + $0x58] sm:$0xff]   ;;  %s2975_s18 = sshll.u32 %s3245_s25, 5  ;;  %s5105_s25 = scalar_lea.sflag [#allocation3], %s315_s9 }
  0x35   : > { %799 = vrot.lane.b32.xlu0 %v758_v61, %s3260_s20  ;;  %1017 = vmatpush1.bf16.msra.mxu0 %v3095_v0  ;;  %v619_v61 = vrot.slane %v3491_v47, 1  ;;  %v3105_v0 = vld [vmem:[%s5159_s2 + $0xb8] sm:$0xff]   ;;  %v5167_v11 = vrot.slane %v3641_v63, 7  ;;  %s2633_s29 = sadd.s32 %s2975_s18, %s3371_s16 }
  0x36   : > { %1018 = vmatprep.subr.bf16.mxu0 %v5171_v1  ;;  %1203 = vmatpush1.bf16.msra.mxu1 %v3104_v42  ;;  %vm3667_vm6 = vcmp.ge.s32.totalorder %v425_v2, 1  ;;  %v639_v42 = vrot.slane %v3561_v16, 1  ;;  %s2976_s24 = sshll.u32 %s2633_s29, 7 }
  0x37   : > { %1204 = vmatprep.subr.bf16.mxu1 %v5171_v1  ;;  %v664_v47 = vsel %vm5190_vm1, %v619_v61, %v620_v57  ;;  %v665_v7 = vsel %vm5190_vm1, %v5169_v53, %v619_v61  ;;  %v521_v19 = vsel %vm5193_vm3, %v5167_v11, %v473_v3  ;;  %v3718_v61 = vadd.s32 40, %v3443_v23  ;;  %s5092_s27 = scalar_lea.hbm %s5163_s6, %s2976_s24 }
  0x38   : > { %801 = vrot.lane.b32.xlu1 %v759_v20, %s3260_s20  ;;  %v716_v13 = vsel %vm3651_vm5, %v664_v47, 0.0  ;;  %v3111_v20 = vld [vmem:[%s5159_s2 + $0x48] sm:$0xff]   ;;  %v570_v28 = vsel %vm3667_vm6, %v521_v19, 0.0  ;;  %v628_v11 = vrot.slane %v3436_v21, 1 }
  0x39   : > { %803 = vrot.lane.b32.xlu0 %v760_v15, %s3260_s20  ;;  %1019 = vmatpush1.bf16.msra.mxu0 %v3097_v18  ;;  %v5258_v15 = vmov 0  ;;  %v763_v57 = vpack.c.bf16 %v716_v13, %v665_v7  ;;  %v520_v18 = vsel %vm5193_vm3, %v473_v3, %v474_v29  ;;  %v390_v29 = vld [vmem:[%s3481_s19 + $0x30] sm:$0xff]  ;;  %v430_v2 = vand.u32 15, %v3718_v61 }
  0x3a   : > { %1020 = vmatprep.subr.bf16.mxu0 %v5171_v1  ;;  %1205 = vmatpush1.bf16.msra.mxu1 %v3106_v45  ;;  %v5259_v15 = vsel %vm3667_vm6, 4294967295, %v5258_v15  ;;  %v3685_v30 = vpack.c.bf16 %v520_v18, %v570_v28  ;;  %v3693_v35 = vmax.f32 %v390_v29, 0.0  ;;  %v623_v3 = vrot.slane %v3429_v17, 1 }
  0x3b   : > { %1206 = vmatprep.subr.bf16.mxu1 %v5171_v1  ;;  %5260 = vst [vmem:[#allocation24_spill] sm:$0xff] %v5259_v15  ;;  %2807 = vmatprep.mubr.msk.bf16.mxu1 %vm5189_vm0, %v763_v57  ;;  %vm3727_vm8 = vcmp.le.s32.totalorder %v430_v2, 14  ;;  %v477_v57 = vrot.slane %v3425_v14, 7  ;;  %v3735_v18 = vadd.s32 56, %v3443_v23  ;;  %v478_v29 = vrot.slane %v3429_v17, 7 }
  0x3c   : > { %871 = vrot.lane.b32.xlu1 %v761_v40, %s3260_s20  ;;  %v5168_v40 = vrot.slane %v3693_v35, 1  ;;  %v661_v19 = vsel %vm5190_vm1, %v622_v5, %v623_v3  ;;  %v625_v5 = vrot.slane %v3463_v34, 1  ;;  %v630_v17 = vrot.slane %v3498_v50, 1 }
  0x3d   : > { %785 = vrot.lane.b32.xlu0 %v751_v39, %s3260_s20  ;;  %1021 = vmatpush1.bf16.msra.mxu0 %v3099_v25  ;;  %v762_v39 = vpack.c.bf16 %v3641_v63, %v3693_v35  ;;  %v422_v25 = vadd.s32 168, %v3443_v23 }
  0x3e   : > { %1022 = vmatprep.subr.bf16.mxu0 %v5171_v1  ;;  %1207 = vmatpush1.bf16.msra.mxu1 %v3108_v52 }
  0x3f   : > { %1208 = vmatprep.subr.bf16.mxu1 %v5171_v1  ;;  %v446_v45 = vand.u32 15, %v422_v25  ;;  %v626_v25 = vrot.slane %v3469_v37, 1 }
  0x40   : > { %1306 = vrot.lane.b32.xlu1 %v762_v39, %s3260_s20  ;;  %v432_v39 = vand.u32 15, %v3735_v18 }
  0x41   : > { %1023 = vmatpush1.bf16.msra.mxu0 %v3101_v44  ;;  %v5170_v44 = vrot.slane %v3547_v9, 1  ;;  %vm615_vm7 = vcmp.le.s32.totalorder %v446_v45, 14 }
  0x42   : > { %1024 = vmatprep.subr.bf16.mxu0 %v5171_v1  ;;  %1209 = vmatpush1.bf16.msra.mxu1 %v3109_v4  ;;  %v624_v4 = vrot.slane %v3449_v27, 1  ;;  %vm3773_vm10 = vcmp.le.s32.totalorder %v432_v39, 14 }
  0x43   : > { %1210 = vmatprep.subr.bf16.mxu1 %v5171_v1  ;;  %v645_v52 = vsel %vm5190_vm1, %v5170_v44, %v639_v42 }
  0x44   : > { %v660_v13 = vsel %vm5190_vm1, %v623_v3, %v624_v4  ;;  %v5265_v3 = vmov 0 }
  0x45   : > { %1025 = vmatpush1.bf16.msra.mxu0 %v3103_v48  ;;  %v644_v48 = vsel %vm5190_vm1, %v639_v42, %v5168_v40  ;;  %v3107_v42 = vld [vmem:[%s5159_s2 + $0xc0] sm:$0xff]   ;;  %v5266_v3 = vsel %vm3773_vm10, 4294967295, %v5265_v3  ;;  %v3804_v40 = vadd.s32 64, %v3443_v23 }
  0x46   : > { %1026 = vmatprep.subr.bf16.mxu0 %v5171_v1  ;;  %1211 = vmatpush1.bf16.msra.mxu1 %v3111_v20  ;;  %v736_v58 = vsel %vm615_vm7, %v644_v48, 0.0  ;;  %v720_v20 = vsel %vm3727_vm8, %v660_v13, 0.0  ;;  %5267 = vst [vmem:[#allocation25_spill] sm:$0xff] %v5266_v3  ;;  %v3780_v13 = vadd.s32 72, %v3443_v23 }
  0x47   : > { %1212 = vmatprep.subr.bf16.mxu1 %v5171_v1  ;;  %v3715_v60 = vpack.c.bf16 %v736_v58, %v645_v52  ;;  %v3761_v45 = vpack.c.bf16 %v720_v20, %v661_v19  ;;  %v516_v52 = vsel %vm5193_vm3, %v477_v57, %v478_v29  ;;  %v479_v58 = vrot.slane %v3449_v27, 7 }
  0x48   : > { %v480_v19 = vrot.slane %v3463_v34, 7  ;;  %v5275_v27 = vmov 0 }
  0x49   : > { %1027 = vmatpush1.bf16.msra.mxu0 %v3105_v0  ;;  %v3721_v0 = vadd.s32 32, %v3443_v23 }
  0x4a   : > { %1412 = vmatprep.subr.bf16.mxu0 %v5171_v1  ;;  %1213 = vmatpush1.bf16.msra.mxu1 %v3112_v32  ;;  %v3749_v32 = vadd.s32 48, %v3443_v23 }
  0x4b   : > { %1214 = vmatprep.subr.bf16.mxu1 %v5171_v1  ;;  %v429_v47 = vand.u32 15, %v3721_v0 }
  0x4d   : > { %vm3743_vm9 = vcmp.ge.s32.totalorder %v429_v47, 1  ;;  %v658_v47 = vsel %vm5190_vm1, %v625_v5, %v626_v25 }
  0x4e   : > { %1215 = vmatpush1.bf16.msra.mxu1 %v3114_v36  ;;  %v517_v36 = vsel %vm5193_vm3, %v476_v24, %v477_v57  ;;  %v431_v24 = vand.u32 15, %v3749_v32  ;;  %v722_v39 = vsel %vm3773_vm10, %v658_v47, 0.0  ;;  %v514_v47 = vsel %vm5193_vm3, %v479_v58, %v480_v19 }
  0x4f   : > { %2076 = vmatprep.subr.bf16.mxu1 %v5171_v1  ;;  %v574_v12 = vsel %vm3743_vm9, %v517_v36, 0.0  ;;  %v659_v36 = vsel %vm5190_vm1, %v624_v4, %v625_v5  ;;  %v3113_v5 = vld [vmem:[%s5159_s2 + $0xd0] sm:$0xff]  }
  0x50   : > { %v741_v57 = vpack.c.bf16 %v516_v52, %v574_v12  ;;  %vm3794_vm11 = vcmp.ge.s32.totalorder %v431_v24, 1  ;;  %v434_v52 = vand.u32 15, %v3780_v13  ;;  %v627_v12 = vrot.slane %v3471_v38, 1 }
  0x51   : > { %v3812_v24 = vpack.c.bf16 %v722_v39, %v659_v36  ;;  %v433_v36 = vand.u32 15, %v3804_v40  ;;  %v3830_v39 = vadd.s32 88, %v3443_v23 }
  0x52   : > { %vm3822_vm12 = vcmp.le.s32.totalorder %v434_v52, 14  ;;  %v657_v52 = vsel %vm5190_vm1, %v626_v25, %v627_v12 }
  0x53   : > { %5273 = vst [vmem:[#allocation27_spill] sm:$0xff] %v3830_v39  ;;  %vm3851_vm13 = vcmp.ge.s32.totalorder %v433_v36, 1  ;;  %v436_v25 = vand.u32 15, %v3830_v39  ;;  %v5281_v39 = vmov 0 }
  0x54   : > { %v5276_v27 = vsel %vm3851_vm13, 4294967295, %v5275_v27 }
  0x55   : > { %5277 = vst [vmem:[#allocation28_spill] sm:$0xff] %v5276_v27  ;;  %vm3875_vm14 = vcmp.le.s32.totalorder %v436_v25, 14  ;;  %v484_v25 = vrot.slane %v3447_v26, 7 }
  0x9b   : > { %v788_v48 = vpop.permute.xlu0 %787 }
  0x9c   : > { %v3771_v2 = vsel %vm5189_vm0, %v3609_v41, %v788_v48  ;;  %v3110_v41 = vld [vmem:[%s5159_s2 + $0xc8] sm:$0xff]   ;;  %v515_v48 = vsel %vm5193_vm3, %v478_v29, %v479_v58 }
  0x9d   : > { %1037 = vmatmul.mubr.bf16.vlgmr.msra.gmra.mrb[0].mxu0 %v3771_v2  ;;  %v576_v53 = vsel %vm3794_vm11, %v515_v48, 0.0  ;;  %v3115_v48 = vld [vmem:[%s5159_s2 + $0xd8] sm:$0xff]  }
  0x9e   : > { %1413 = vmatpush1.bf16.msra.mxu0 %v3107_v42  ;;  %2786 = vmatprep.mubr.msk.bf16.mxu0 %vm5189_vm0, %v3761_v45  ;;  %v742_v58 = vpack.c.bf16 %v514_v47, %v576_v53  ;;  %v3849_v47 = vadd.s32 80, %v3443_v23 }
  0x9f   : > { %v790_v20 = vpop.permute.xlu0 %789  ;;  %1414 = vmatprep.subr.bf16.mxu0 %v5171_v1 }
  0xa0   : > { %v3807_v4 = vsel %vm5189_vm0, %v741_v57, %v790_v20  ;;  %v5270_v57 = vmov 0  ;;  %v656_v20 = vsel %vm5190_vm1, %v627_v12, %v628_v11  ;;  %v629_v12 = vrot.slane %v3447_v26, 1 }
  0xa1   : > { %v5271_v57 = vsel %vm3822_vm12, 4294967295, %v5270_v57  ;;  %v724_v34 = vsel %vm3822_vm12, %v656_v20, 0.0 }
  0xa2   : > { %1415 = vmatpush1.bf16.msra.mxu0 %v3110_v41  ;;  %v481_v41 = vrot.slane %v3469_v37, 7  ;;  %5272 = vst [vmem:[#allocation26_spill] sm:$0xff] %v5271_v57  ;;  %v5274_v37 = vmov 0  }
  0xa3   : > { %v3814_v29 = vpop.permute.xlu0 %795  ;;  %1416 = vmatprep.subr.bf16.mxu0 %v5171_v1  ;;  %v792_v1 = vpop.permute.xlu1 %791 }
  0xa4   : > { %v513_v53 = vsel %vm5193_vm3, %v480_v19, %v481_v41  ;;  %v3859_v20 = vsel %vm5189_vm0, %v742_v58, %v792_v1  ;;  %v3116_v19 = vld [vmem:[%s5159_s2 + $0xe0] sm:$0xff]   ;;  %v435_v1 = vand.u32 15, %v3849_v47  ;;  %v483_v58 = vrot.slane %v3436_v21, 7  ;;  %v3117_v21 = vld [vmem:[%s5159_s2 + $0xe8] sm:$0xff]  }
  0xa5   : > { %1045 = vmatmul.mubr.bf16.gmra.mrb[4].mxu0 %v3807_v4  ;;  %v578_v15 = vsel %vm3851_vm13, %v513_v53, 0.0  ;;  %v655_v53 = vsel %vm5190_vm1, %v628_v11, %v629_v12 }
  0xa6   : > { %1417 = vmatpush1.bf16.msra.mxu0 %v3113_v5  ;;  %2787 = vmatprep.mubr.msk.bf16.mxu0 %vm5189_vm0, %v3812_v24  ;;  %v482_v5 = vrot.slane %v3471_v38, 7  ;;  %v3861_v38 = vpack.c.bf16 %v724_v34, %v657_v52  ;;  %v5278_v34 = vmov 0  ;;  %v3882_v52 = vadd.s32 104, %v3443_v23 }
  0xa7   : > { %v3840_v44 = vpop.permute.xlu0 %799  ;;  %1418 = vmatprep.subr.bf16.mxu0 %v5274_v37  ;;  %v5279_v34 = vsel %vm3875_vm14, 4294967295, %v5278_v34  ;;  %v794_v27 = vpop.permute.xlu1 %793  ;;  %vm3895_vm15 = vcmp.ge.s32.totalorder %v435_v1, 1 }
  0xa8   : > { %v512_v14 = vsel %vm5193_vm3, %v481_v41, %v482_v5  ;;  %5280 = vst [vmem:[#allocation29_spill] sm:$0xff] %v5279_v34  ;;  %v5282_v39 = vsel %vm3895_vm15, 4294967295, %v5281_v39  ;;  %v634_v34 = vrot.slane %v3515_v59, 1 }
  0xa9   : > { %v743_v41 = vpack.c.bf16 %v512_v14, %v578_v15  ;;  %v511_v14 = vsel %vm5193_vm3, %v482_v5, %v483_v58  ;;  %v631_v15 = vrot.slane %v3500_v51, 1 }
  0xaa   : > { %1419 = vmatpush1.bf16.msra.mxu0 %v3115_v48  ;;  %v654_v48 = vsel %vm5190_vm1, %v629_v12, %v630_v17  ;;  %v438_v12 = vand.u32 15, %v3882_v52  ;;  %v580_v26 = vsel %vm3895_vm15, %v511_v14, 0.0  ;;  %v3119_v14 = vld [vmem:[%s5159_s2 + $0xf8] sm:$0xff]  }
  0xab   : > { %v3866_v36 = vpop.permute.xlu0 %803  ;;  %1420 = vmatprep.subr.bf16.mxu0 %v5274_v37  ;;  %v726_v3 = vsel %vm3875_vm14, %v654_v48, 0.0  ;;  %v3908_v48 = vadd.s32 96, %v3443_v23  ;;  %v3911_v1 = vsel %vm5189_vm0, %v743_v41, %v794_v27  ;;  %v485_v27 = vrot.slane %v3498_v50, 7 }
  0xac   : > { %v3915_v5 = vpack.c.bf16 %v726_v3, %v655_v53  ;;  %vm3926_vm7 = vcmp.le.s32.totalorder %v438_v12, 14  ;;  %v5283_v41 = vmov 0  ;;  %v3934_v3 = vadd.s32 120, %v3443_v23 }
  0xad   : > { %1053 = vmatmul.mubr.bf16.gmra.mrb[8].mxu0 %v3859_v20  ;;  %v5284_v41 = vsel %vm3926_vm7, 4294967295, %v5283_v41  ;;  %v653_v53 = vsel %vm5190_vm1, %v630_v17, %v631_v15  ;;  %v486_v12 = vrot.slane %v3500_v51, 7  ;;  %v633_v50 = vrot.slane %v3485_v43, 1 }
  0xae   : > { %2788 = vmatprep.mubr.msk.bf16.mxu0 %vm5189_vm0, %v3861_v38  ;;  %1421 = vmatpush1.bf16.msra.mxu0 %v3116_v19  ;;  %v632_v19 = vrot.slane %v3461_v33, 1  ;;  %5285 = vst [vmem:[#allocation30_spill] sm:$0xff] %v5284_v41  ;;  %5286 = vst [vmem:[#allocation31_spill] sm:$0xff] %v3934_v3  ;;  %v509_v17 = vsel %vm5193_vm3, %v484_v25, %v485_v27  ;;  %v487_v51 = vrot.slane %v3461_v33, 7  ;;  %v488_v41 = vrot.slane %v3485_v43, 7 }
  0xaf   : > { %v786_v57 = vpop.permute.xlu0 %785  ;;  %1422 = vmatprep.subr.bf16.mxu0 %v5274_v37 }
  0xb0   : > { %v808_v11 = vsel %vm5189_vm0, %v3685_v30, %v786_v57  ;;  %v3118_v30 = vld [vmem:[%s5159_s2 + $0xf0] sm:$0xff]   ;;  %v510_v57 = vsel %vm5193_vm3, %v483_v58, %v484_v25  ;;  %v3120_v25 = vld [vmem:[%s5159_s2 + $0x100] sm:$0xff]  }
  0xb1   : > { %1225 = vmatmul.mubr.bf16.vlgmr.msra.gmra.mrb[0].mxu1 %v808_v11  ;;  %v744_v58 = vpack.c.bf16 %v510_v57, %v580_v26  ;;  %v5287_v26 = vmov 0 }
  0xb2   : > { %2808 = vmatprep.mubr.msk.bf16.mxu1 %vm5189_vm0, %v3572_v22  ;;  %1423 = vmatpush1.bf16.msra.mxu0 %v3117_v21  ;;  %v652_v21 = vsel %vm5190_vm1, %v631_v15, %v632_v19  ;;  %v437_v22 = vand.u32 15, %v3908_v48  ;;  %v440_v15 = vand.u32 15, %v3934_v3  ;;  %vm5290_vm1 = vcmask 523264  }
  0xb3   : > { %1424 = vmatprep.subr.bf16.mxu0 %v5274_v37  ;;  %v728_v11 = vsel %vm3926_vm7, %v652_v21, 0.0  ;;  %v3963_v57 = vsel %vm5290_vm1, %v744_v58, %v3814_v29  ;;  %vm5291_vm6 = vmmov %vm5290_vm1  ;;  %v5292_v29 = vmov 0  ;;  %v635_v3 = vrot.slane %v3523_v62, 1 }
  0xb4   : > { %v3967_v21 = vpack.c.bf16 %v728_v11, %v653_v53  ;;  %vm3978_vm1 = vcmp.le.s32.totalorder %v440_v15, 14  ;;  %v798_v15 = vpop.permute.xlu1 %797 }
  0xb5   : > { %1061 = vmatmul.mubr.bf16.gmra.mrb[12].mxu0 %v3911_v1  ;;  %v5293_v29 = vsel %vm3978_vm1, 4294967295, %v5292_v29 }
  0xb6   : > { %2789 = vmatprep.mubr.msk.bf16.mxu0 %vm5189_vm0, %v3915_v5  ;;  %1425 = vmatpush1.bf16.msra.mxu0 %v3118_v30  ;;  %vm3950_vm0 = vcmp.ge.s32.totalorder %v437_v22, 1  ;;  %v3958_v30 = vadd.s32 112, %v3443_v23  ;;  %v508_v22 = vsel %vm5193_vm3, %v485_v27, %v486_v12  ;;  %5294 = vst [vmem:[#allocation33_spill] sm:$0xff] %v5293_v29  ;;  %vm5296_vm3 = vcmask 523264  }
  0xb7   : > { %1426 = vmatprep.subr.bf16.mxu0 %v5274_v37  ;;  %v5288_v26 = vsel %vm3950_vm0, 4294967295, %v5287_v26  ;;  %v489_v29 = vrot.slane %v3515_v59, 7  ;;  %v490_v59 = vrot.slane %v3523_v62, 7  ;;  %v5318_v62 = vmov 0 }
  0xb8   : > { %5289 = vst [vmem:[#allocation32_spill] sm:$0xff] %v5288_v26  ;;  %v439_v53 = vand.u32 15, %v3958_v30 }
  0xb9   : > { %1233 = vmatmul.mubr.bf16.gmra.mrb[4].mxu1 %v3771_v2  ;;  %v582_v2 = vsel %vm3950_vm0, %v509_v17, 0.0  ;;  %v3121_v17 = vld [vmem:[%s5159_s2 + $0x108] sm:$0xff]  }
  0xba   : > { %2809 = vmatprep.mubr.msk.bf16.mxu1 %vm5291_vm6, %v3761_v45  ;;  %1427 = vmatpush1.bf16.msra.mxu0 %v3119_v14  ;;  %vm5295_vm6 = vcmp.lt.s32.totalorder %v3443_v23, 7  ;;  %v3986_v14 = vadd.s32 136, %v3443_v23  ;;  %v745_v27 = vpack.c.bf16 %v508_v22, %v582_v2  ;;  %v4010_v22 = vadd.s32 128, %v3443_v23 }
  0xbb   : > { %1428 = vmatprep.subr.bf16.mxu0 %v5274_v37  ;;  %v650_v58 = vsel %vm5295_vm6, %v633_v50, %v634_v34  ;;  %vm5297_vm7 = vmmov %vm5295_vm6  ;;  %vm5298_vm6 = vcmp.lt.s32.totalorder %v3443_v23, 1 }
  0xbc   : > { %v651_v11 = vsel %vm5297_vm7, %v632_v19, %v633_v50  ;;  %v730_v33 = vsel %vm3978_vm1, %v650_v58, 0.0  ;;  %v507_v26 = vsel %vm5298_vm6, %v486_v12, %v487_v51  ;;  %v5299_v50 = vmov 0  ;;  %v3122_v58 = vld [vmem:[%s5159_s2 + $0x110] sm:$0xff]  }
  0xbd   : > { %1069 = vmatmul.mubr.bf16.gmra.mrb[16].mxu0 %v3963_v57  ;;  %v442_v19 = vand.u32 15, %v3986_v14  ;;  %vm5302_vm7 = vcmask 523264   ;;  %v4018_v12 = vpack.c.bf16 %v730_v33, %v651_v11  ;;  %vm5304_vm1 = vcmp.lt.s32.totalorder %v3443_v23, 1 }
  0xbe   : > { %2790 = vmatprep.mubr.msk.bf16.mxu0 %vm5296_vm3, %v3967_v21  ;;  %1429 = vmatpush1.bf16.msra.mxu0 %v3120_v25  ;;  %vm4003_vm3 = vcmp.ge.s32.totalorder %v439_v53, 1  ;;  %v636_v25 = vrot.slane %v3509_v55, 1  ;;  %v4014_v2 = vsel %vm5302_vm7, %v745_v27, %v798_v15  ;;  %vm5303_vm6 = vmmov %vm5302_vm7  ;;  %v506_v53 = vsel %vm5304_vm1, %v487_v51, %v488_v41 }
  0xbf   : > { %1430 = vmatprep.subr.bf16.mxu0 %v5274_v37  ;;  %v5300_v50 = vsel %vm4003_vm3, 4294967295, %v5299_v50  ;;  %v584_v43 = vsel %vm4003_vm3, %v507_v26, 0.0  ;;  %vm4029_vm7 = vcmp.le.s32.totalorder %v442_v19, 14  ;;  %v5305_v27 = vmov 0  ;;  %v3123_v26 = vld [vmem:[%s5159_s2 + $0x118] sm:$0xff]  }
  0xc0   : > { %5301 = vst [vmem:[#allocation34_spill] sm:$0xff] %v5300_v50  ;;  %v5306_v27 = vsel %vm4029_vm7, 4294967295, %v5305_v27  ;;  %v441_v11 = vand.u32 15, %v4010_v22  ;;  %vm5309_vm1 = vcmask 523264   ;;  %v746_v51 = vpack.c.bf16 %v506_v53, %v584_v43 }
  0xc1   : > { %1241 = vmatmul.mubr.bf16.gmra.mrb[8].mxu1 %v3807_v4  ;;  %5307 = vst [vmem:[#allocation35_spill] sm:$0xff] %v5306_v27  ;;  %v5312_v43 = vmov 0  ;;  %v637_v53 = vrot.slane %v3511_v56, 1  ;;  %v492_v27 = vrot.slane %v3511_v56, 7  ;;  %v494_v56 = vrot.slane %v3561_v16, 7 }
  0xc2   : > { %2810 = vmatprep.mubr.msk.bf16.mxu1 %vm5303_vm6, %v3812_v24  ;;  %1431 = vmatpush1.bf16.msra.mxu0 %v3121_v17  ;;  %vm5308_vm6 = vcmp.lt.s32.totalorder %v3443_v23, 7  ;;  %v4037_v17 = vadd.s32 152, %v3443_v23 }
  0xc3   : > { %1432 = vmatprep.subr.bf16.mxu0 %v5274_v37  ;;  %v648_v33 = vsel %vm5308_vm6, %v635_v3, %v636_v25  ;;  %vm5310_vm3 = vmmov %vm5308_vm6  ;;  %vm5311_vm6 = vcmp.lt.s32.totalorder %v3443_v23, 1 }
  0xc4   : > { %v649_v15 = vsel %vm5310_vm3, %v634_v34, %v635_v3  ;;  %v732_v19 = vsel %vm4029_vm7, %v648_v33, 0.0  ;;  %v505_v50 = vsel %vm5311_vm6, %v488_v41, %v489_v29  ;;  %v4060_v34 = vadd.s32 144, %v3443_v23 }
  0xc5   : > { %1077 = vmatmul.mubr.bf16.gmra.mrb[20].mxu0 %v4014_v2  ;;  %vm5315_vm3 = vcmask 523264   ;;  %v4069_v41 = vpack.c.bf16 %v732_v19, %v649_v15  ;;  %vm5317_vm7 = vcmp.lt.s32.totalorder %v3443_v23, 1 }
  0xc6   : > { %2791 = vmatprep.mubr.msk.bf16.mxu0 %vm5309_vm1, %v4018_v12  ;;  %1433 = vmatpush1.bf16.msra.mxu0 %v3122_v58  ;;  %vm4053_vm1 = vcmp.ge.s32.totalorder %v441_v11, 1  ;;  %v444_v58 = vand.u32 15, %v4037_v17  ;;  %v4065_v3 = vsel %vm5315_vm3, %v746_v51, %v3840_v44  ;;  %vm5316_vm6 = vmmov %vm5315_vm3  ;;  %v504_v33 = vsel %vm5317_vm7, %v489_v29, %v490_v59 }
  0xc7   : > { %1434 = vmatprep.subr.bf16.mxu0 %v5274_v37  ;;  %v5313_v43 = vsel %vm4053_vm1, 4294967295, %v5312_v43  ;;  %v586_v11 = vsel %vm4053_vm1, %v505_v50, 0.0  ;;  %v5321_v44 = vrot.slane %v3547_v9, 1  ;;  %vm5322_vm3 = vcmp.lt.s32.totalorder %v3443_v23, 7  ;;  %vm5323_vm7 = vmmov %vm5316_vm6  ;;  %v802_v50 = vpop.permute.xlu1 %801 }
  0xc8   : > { %5314 = vst [vmem:[#allocation36_spill] sm:$0xff] %v5313_v43  ;;  %vm4076_vm0 = vcmp.le.s32.totalorder %v444_v58, 14  ;;  %v443_v15 = vand.u32 15, %v4060_v34  ;;  %v747_v29 = vpack.c.bf16 %v504_v33, %v586_v11  ;;  %vm5327_vm1 = vcmp.lt.s32.totalorder %v3443_v23, 1 }
  0xc9   : > { %1249 = vmatmul.mubr.bf16.gmra.mrb[12].mxu1 %v3859_v20  ;;  %v5319_v62 = vsel %vm4076_vm0, 4294967295, %v5318_v62  ;;  %v646_v51 = vsel %vm5322_vm3, %v637_v53, %v5321_v44  ;;  %v5325_v44 = vmov 0  ;;  %v421_v43 = vadd.s32 160, %v3443_v23 }
  0xca   : > { %2811 = vmatprep.mubr.msk.bf16.mxu1 %vm5316_vm6, %v3861_v38  ;;  %1435 = vmatpush1.bf16.msra.mxu0 %v3123_v26  ;;  %5320 = vst [vmem:[#allocation37_spill] sm:$0xff] %v5319_v62  ;;  %v491_v26 = vrot.slane %v3509_v55, 7  ;;  %vm5324_vm6 = vmmov %vm5322_vm3  ;;  %v734_v58 = vsel %vm4076_vm0, %v646_v51, 0.0  ;;  %vm4094_vm3 = vcmp.ge.s32.totalorder %v443_v15, 1  ;;  %v840_v33 = vsel %vm5323_vm7, %v747_v29, %v802_v50 }
  0xcb   : > { %2452 = vmatprep.subr.bf16.mxu0 %v5274_v37  ;;  %v647_v19 = vsel %vm5324_vm6, %v636_v25, %v637_v53  ;;  %v5326_v44 = vsel %vm4094_vm3, 4294967295, %v5325_v44  ;;  %vm5328_vm6 = vmmov %vm5323_vm7  ;;  %v445_v51 = vand.u32 15, %v421_v43  ;;  %v493_v15 = vrot.slane %v3547_v9, 7  ;;  %v872_v43 = vpop.permute.xlu1 %871 }
  0xcc   : > { %v503_v55 = vsel %vm5327_vm1, %v490_v59, %v491_v26  ;;  %v772_v25 = vpack.c.bf16 %v734_v58, %v647_v19  ;;  %vm5329_vm0 = vmmov %vm5327_vm1 }
  0xcd   : > { %1085 = vmatmul.mubr.bf16.gmra.mrb[24].mxu0 %v4065_v3  ;;  %v502_v53 = vsel %vm5329_vm0, %v491_v26, %v492_v27  ;;  %v588_v11 = vsel %vm4094_vm3, %v503_v55, 0.0  ;;  %vm5330_vm1 = vmmov %vm5328_vm6 }
  0xce   : > { %2792 = vmatprep.mubr.msk.bf16.mxu0 %vm5323_vm7, %v4069_v41  ;;  %v748_v59 = vpack.c.bf16 %v502_v53, %v588_v11  ;;  %vm469_vm7 = vcmp.ge.s32.totalorder %v445_v51, 1  ;;  %vm5331_vm14 = vmmov %vm5329_vm0 }
  0xcf   : > { %v501_v29 = vsel %vm5331_vm14, %v492_v27, %v493_v15  ;;  %vm5332_vm0 = vmmov %vm5330_vm1 }
  0xd0   : > { %v844_v26 = vsel %vm5332_vm0, %v748_v59, %v3866_v36  ;;  %vm5334_vm3 = vmmov %vm5331_vm14  ;;  %v590_v9 = vsel %vm469_vm7, %v501_v29, 0.0  ;;  %v3124_v59 = vld [vmem:[%s5161_s4 + $0x60] sm:$0xff]  }
  0xd1   : > { %1257 = vmatmul.mubr.bf16.gmra.mrb[16].mxu1 %v3911_v1  ;;  %v500_v55 = vsel %vm5334_vm3, %v493_v15, %v494_v56  ;;  %vm5336_vm14 = vmmov %vm5332_vm0 }
  0xd2   : > { %2812 = vmatprep.mubr.msk.bf16.mxu1 %vm5328_vm6, %v3915_v5  ;;  %vm5333_vm6 = vmmov %vm5332_vm0  ;;  %v749_v16 = vpack.c.bf16 %v500_v55, %v590_v9  ;;  %2077 = vmatpush1.bf16.msra.mxu1 %v3124_v59  ;;  %v3125_v55 = vld [vmem:[%s5161_s4 + $0x68] sm:$0xff]  }
  0xd3   : > { %vm5337_vm15 = vmmov %vm5332_vm0  ;;  %2078 = vmatprep.subr.bf16.mxu1 %v5274_v37  ;;  %v3132_v59 = vld [vmem:[%s5161_s4 + $0xc8] sm:$0xff]  }
  0xd4   : > { %v875_v27 = vsel %vm5336_vm14, %v749_v16, %v872_v43  ;;  %vm5338_vm3 = vmmov %vm5332_vm0 }
  0xd5   : > { %1093 = vmatmul.mubr.bf16.gmra.mrb[28].mxu0 %v840_v33  ;;  %vm5339_vm7 = vmmov %vm5332_vm0 }
  0xd6   : > { %2793 = vmatprep.mubr.msk.bf16.mxu0 %vm5330_vm1, %v772_v25  ;;  %vm5335_vm1 = vmmov %vm5332_vm0  ;;  %2079 = vmatpush1.bf16.msra.mxu1 %v3125_v55 }
  0xd7   : > { %vm5343_vm14 = vmmov %vm5332_vm0  ;;  %2080 = vmatprep.subr.bf16.mxu1 %v5274_v37 }
  0xd9   : > { %1265 = vmatmul.mubr.bf16.gmra.mrb[20].mxu1 %v3963_v57 }
  0xda   : > { %2813 = vmatprep.mubr.msk.bf16.mxu1 %vm5333_vm6, %v3967_v21  ;;  %vm5340_vm6 = vmmov %vm5332_vm0 }
  0xdd   : > { %1101 = vmatmul.mubr.bf16.gmra.mrb[32].mxu0 %v844_v26 }
  0xde   : > { %2794 = vmatprep.mubr.msk.bf16.mxu0 %vm5335_vm1, %v3715_v60  ;;  %vm5342_vm1 = vmmov %vm5332_vm0 }
  0xe1   : > { %1273 = vmatmul.mubr.bf16.gmra.mrb[24].mxu1 %v4014_v2 }
  0xe2   : > { %2814 = vmatprep.mubr.msk.bf16.mxu1 %vm5337_vm15, %v4018_v12  ;;  %vm5341_vm15 = vmmov %vm5332_vm0 }
  0xe5   : > { %1109 = vmatmul.mubr.bf16.gmra.mrb[36].mxu0 %v875_v27 }
  0xe6   : > { %2853 = vmatprep.mubr.msk.bf16.mxu0 %vm5332_vm0, %v3761_v45 }
  0xe9   : > { %1281 = vmatmul.mubr.bf16.gmra.mrb[28].mxu1 %v4065_v3 }
  0xea   : > { %2815 = vmatprep.mubr.msk.bf16.mxu1 %vm5338_vm3, %v4069_v41  ;;  %vm5344_vm3 = vmmov %vm5332_vm0 }
  0xed   : > { %1445 = vmatmul.mubr.bf16.vlgmr.msra.gmra.mrb[40].mxu0 %v3807_v4  ;;  %v641_v4 = vrot.slane %v3641_v63, 1 }
  0xee   : > { %2854 = vmatprep.mubr.msk.bf16.mxu0 %vm5339_vm7, %v3812_v24  ;;  %vm5345_vm7 = vmmov %vm5332_vm0  ;;  %v423_v24 = vadd.s32 176, %v3443_v23 }
  0xf1   : > { %1289 = vmatmul.mubr.bf16.gmra.mrb[32].mxu1 %v840_v33 }
  0xf2   : > { %2816 = vmatprep.mubr.msk.bf16.mxu1 %vm5340_vm6, %v772_v25 }
  0xf5   : > { %1453 = vmatmul.mubr.bf16.gmra.mrb[44].mxu0 %v3859_v20  ;;  %v5346_v20 = vrot.slane %v3489_v46, 1 }
  0xf6   : > { %2855 = vmatprep.mubr.msk.bf16.mxu0 %vm5341_vm15, %v3861_v38  ;;  %v424_v38 = vadd.s32 184, %v3443_v23  ;;  %vm5347_vm15 = vcmp.lt.s32.totalorder %v3443_v23, 7 }
  0xf7   : > { %v666_v36 = vsel %vm5347_vm15, %v641_v4, %v5346_v20 }
  0xf8   : > { %v448_v45 = vand.u32 15, %v424_v38 }
  0xf9   : > { %1297 = vmatmul.mubr.bf16.gmra.mrb[36].mxu1 %v844_v26 }
  0xfa   : > { %vm617_vm6 = vcmp.le.s32.totalorder %v448_v45, 14 }
  0xfd   : > { %1461 = vmatmul.mubr.bf16.gmra.mrb[48].mxu0 %v3911_v1  ;;  %v447_v1 = vand.u32 15, %v423_v24 }
  0xfe   : > { %2856 = vmatprep.mubr.msk.bf16.mxu0 %vm5342_vm1, %v3915_v5  ;;  %v495_v5 = vrot.slane %v3693_v35, 7  ;;  %vm5348_vm1 = vmmov %vm5332_vm0 }
 0x105   : > { %1469 = vmatmul.mubr.bf16.gmra.mrb[52].mxu0 %v3963_v57  ;;  %v5349_v57 = vrot.slane %v3693_v35, 1  ;;  %v1307_v35 = vpop.permute.xlu1 %1306 }
 0x106   : > { %2857 = vmatprep.mubr.msk.bf16.mxu0 %vm5343_vm14, %v3967_v21  ;;  %vm5350_vm14 = vmmov %vm5347_vm15 }
 0x107   : > { %v643_v21 = vsel %vm5350_vm14, %v5349_v57, %v641_v4  ;;  %vm5354_vm15 = vmmov %vm5348_vm1 }
 0x10d   : > { %1477 = vmatmul.mubr.bf16.gmra.mrb[56].mxu0 %v4014_v2  ;;  %v738_v2 = vsel %vm617_vm6, %v666_v36, 0.0 }
 0x10e   : > { %2858 = vmatprep.mubr.msk.bf16.mxu0 %vm5332_vm0, %v4018_v12  ;;  %vm471_vm0 = vcmp.ge.s32.totalorder %v447_v1, 1  ;;  %v774_v12 = vpack.c.bf16 %v738_v2, %v643_v21  ;;  %v3126_v1 = vld [vmem:[%s5161_s4 + $0x70] sm:$0xff]   ;;  %v4191_v21 = vstv %s1593_s7  ;;  %v4193_v2 = vstv %s1595_s17  ;;  %s5004_s17 = scalar_lea.vmem [#allocation2], %s2743_s12 }
 0x10f   : > { %2081 = vmatpush1.bf16.msra.mxu1 %v3126_v1  ;;  %vm1615_vm6 = vcmp.ge.s32.totalorder %v4060_v34, %v4191_v21  ;;  %vm1636_vm14 = vcmp.lt.s32.totalorder %v4060_v34, %v4193_v2  ;;  %s2636_s30 = sshll.u32 %s5004_s17, 4  ;;  %s5099_s30 = int_to_ptr.vmem [resolvable:$true] %s2636_s30 }
 0x110   : > { %2082 = vmatprep.subr.bf16.mxu1 %v5274_v37  ;;  %s3163_s16 = scalar_lea.vmem %s5099_s30, 2048 }
 0x111   : > { %p3164_p4 = scmp.ne.s32.totalorder %s5099_s30, %s3163_s16 }
 0x113   : > { %p3165_p5 = pnand %p3164_p4, %p3350_p3 }
 0x115   : > { %1485 = vmatmul.mubr.bf16.gmra.mrb[60].mxu0 %v4065_v3  ;;  %v5352_v3 = vrot.slane %v3641_v63, 7  ;;  %p3166_p6 = pneg %p3165_p5 }
 0x116   : > { %2859 = vmatprep.mubr.msk.bf16.mxu0 %vm5344_vm3, %v4069_v41  ;;  %vm5351_vm3 = vcmp.lt.s32.totalorder %v3443_v23, 1 }
 0x117   : > { %v499_v46 = vsel %vm5351_vm3, %v494_v56, %v495_v5 }
 0x118   : > { %v592_v50 = vsel %vm471_vm0, %v499_v46, 0.0  ;;  %vm4202_vm0 = vmand %vm1615_vm6, %vm1636_vm14  ;;  %vm1618_vm6 = vcmp.lt.s32.totalorder %v3443_v23, %v4193_v2  ;;  %vm1598_vm14 = vcmp.ge.s32.totalorder %v3630_v49, %v4191_v21 }
 0x11d   : > { %1493 = vmatmul.mubr.bf16.gmra.mrb[64].mxu0 %v840_v33 }
 0x11e   : > { %2860 = vmatprep.mubr.msk.bf16.mxu0 %vm5345_vm7, %v772_v25  ;;  %vm5353_vm7 = vmmov %vm5351_vm3  ;;  %vm1616_vm3 = vcmp.ge.s32.totalorder %v4037_v17, %v4191_v21 }
 0x11f   : > { %v498_v41 = vsel %vm5353_vm7, %v495_v5, %v5352_v3  ;;  %vm1637_vm7 = vcmp.lt.s32.totalorder %v4037_v17, %v4193_v2  ;;  %v3131_v17 = vld [vmem:[%s5161_s4 + $0xc0] sm:$0xff]  }
 0x120   : > { %2453 = vmatpush1.bf16.msra.mxu0 %v3131_v17  ;;  %v3136_v17 = vld [vmem:[%s5161_s4 + $0xa0] sm:$0xff]  }
 0x121   : > { %2454 = vmatprep.subr.bf16.mxu0 %v5274_v37 }
 0x124   : > { %2455 = vmatpush1.bf16.msra.mxu0 %v3132_v59 }
 0x125   : > { %1501 = vmatmul.mubr.bf16.gmra.mrb[68].mxu0 %v844_v26  ;;  %2456 = vmatprep.subr.bf16.mxu0 %v5274_v37 }
 0x126   : > { %2861 = vmatprep.mubr.msk.bf16.mxu0 %vm5348_vm1, %v3715_v60  ;;  %v750_v60 = vpack.c.bf16 %v498_v41, %v592_v50  ;;  %v5355_v41 = vmov 0 }
 0x127   : > { %v5356_v41 = vsel %vm4202_vm0, 4294967295, %v5355_v41  ;;  %vm5368_vm0 = vcmp.lt.s32.totalorder %v3443_v23, 7 }
 0x128   : > { %v1310_v19 = vsel %vm5348_vm1, %v750_v60, %v1307_v35  ;;  %vm1597_vm1 = vcmp.ge.s32.totalorder %v3443_v23, %v4191_v21 }
 0x12d   : > { %1509 = vmatmul.mubr.bf16.gmra.mrb[72].mxu0 %v875_v27 }
 0x12e   : > { %2862 = vmatprep.mubr.msk.bf16.mxu0 %vm5354_vm15, %v774_v12  ;;  %vm4212_vm15 = vmand %vm1616_vm3, %vm1637_vm7  ;;  %vm1619_vm3 = vcmp.lt.s32.totalorder %v3630_v49, %v4193_v2  ;;  %v4367_v49 = vld [vmem:[%s5161_s4 + $0x110] sm:$0xff]  }
 0x12f   : > { %vm1638_vm7 = vmand %vm1597_vm1, %vm1618_vm6  ;;  %5366 = vst [vmem:[#allocation45_spill] sm:$0xff] %v4367_v49  ;;  %vm1599_vm1 = vcmp.ge.s32.totalorder %v3545_v8, %v4191_v21  ;;  %vm1620_vm6 = vcmp.lt.s32.totalorder %v3545_v8, %v4193_v2 }
 0x135   : > { %1517 = vmatmul.mubr.bf16.gmra.mrb[76].mxu0 %v1310_v19  ;;  %v5357_v19 = vmov 0 }
 0x136   : > { %v5358_v19 = vsel %vm4212_vm15, 4294967295, %v5357_v19  ;;  %vm1639_vm15 = vmand %vm1598_vm14, %vm1619_vm3  ;;  %vm1621_vm14 = vcmp.lt.s32.totalorder %v3507_v54, %v4193_v2 }
 0x137   : > { %vm1640_vm3 = vmand %vm1599_vm1, %vm1620_vm6  ;;  %vm1622_vm6 = vcmp.lt.s32.totalorder %v3721_v0, %v4193_v2 }
 0x170   : > { %v1038_v58 = vpop.f32.mrb[0].mxu0 }
 0x171   : > { %v1040_v33 = vpop.f32.mrb[1].mxu0 }
 0x172   : > { %v1041_v25 = vpop.f32.mrb[2].mxu0  ;;  %v3127_v33 = vld [vmem:[%s5161_s4 + $0x78] sm:$0xff]  }
 0x173   : > { %v1043_v56 = vpop.f32.mrb[3].mxu0  ;;  %2083 = vmatpush1.bf16.msra.mxu1 %v3127_v33 }
 0x174   : > { %2084 = vmatprep.subr.bf16.mxu1 %v5274_v37 }
 0x178   : > { %v1046_v53 = vpop.f32.mrb[4].mxu0 }
 0x179   : > { %v1048_v63 = vpop.f32.mrb[5].mxu0 }
 0x17a   : > { %v1049_v11 = vpop.f32.mrb[6].mxu0 }
 0x17b   : > { %v1051_v51 = vpop.f32.mrb[7].mxu0 }
 0x180   : > { %v1054_v15 = vpop.f32.mrb[8].mxu0 }
 0x181   : > { %v1056_v29 = vpop.f32.mrb[9].mxu0 }
 0x182   : > { %v1057_v26 = vpop.f32.mrb[10].mxu0 }
 0x183   : > { %v1059_v9 = vpop.f32.mrb[11].mxu0 }
 0x184   : > { %v1226_v16 = vpop.f32.mrb[0].mxu1 }
 0x185   : > { %v4183_v43 = vadd.f32 %v1226_v16, %v1038_v58  ;;  %v1228_v27 = vpop.f32.mrb[1].mxu1 }
 0x186   : > { %v1229_v38 = vpop.f32.mrb[2].mxu1 }
 0x187   : > { %v4185_v45 = vadd.f32 %v1229_v38, %v1041_v25  ;;  %v1231_v4 = vpop.f32.mrb[3].mxu1  ;;  %v3134_v38 = vld [vmem:[%s5161_s4 + $0xd0] sm:$0xff]  }
 0x188   : > { %v1062_v24 = vpop.f32.mrb[12].mxu0  ;;  %2457 = vmatpush1.bf16.msra.mxu0 %v3134_v38 }
 0x189   : > { %v1064_v20 = vpop.f32.mrb[13].mxu0  ;;  %2458 = vmatprep.subr.bf16.mxu0 %v5274_v37 }
 0x18a   : > { %v1065_v36 = vpop.f32.mrb[14].mxu0  ;;  %v3130_v20 = vld [vmem:[%s5161_s4 + $0x90] sm:$0xff]  }
 0x18b   : > { %v1067_v5 = vpop.f32.mrb[15].mxu0 }
 0x18c   : > { %v1234_v57 = vpop.f32.mrb[4].mxu1 }
 0x18d   : > { %v4195_v46 = vadd.f32 %v1234_v57, %v1046_v53  ;;  %v1236_v12 = vpop.f32.mrb[5].mxu1  ;;  %v3128_v53 = vld [vmem:[%s5161_s4 + $0x80] sm:$0xff]  }
 0x18e   : > { %v1237_v3 = vpop.f32.mrb[6].mxu1  ;;  %2085 = vmatpush1.bf16.msra.mxu1 %v3128_v53  ;;  %v4251_v12 = vld [vmem:[%s5161_s4 + $0xd8] sm:$0xff]  }
 0x18f   : > { %v4206_v50 = vadd.f32 %v1237_v3, %v1049_v11  ;;  %v1239_v60 = vpop.f32.mrb[7].mxu1  ;;  %2086 = vmatprep.subr.bf16.mxu1 %v5274_v37  ;;  %5359 = vst [vmem:[#allocation38_spill] sm:$0xff] %v4251_v12  ;;  %2459 = vmatpush1.bf16.msra.mxu0 %v4251_v12 }
 0x190   : > { %v1070_v35 = vpop.f32.mrb[16].mxu0  ;;  %2460 = vmatprep.subr.bf16.mxu0 %v5274_v37 }
 0x191   : > { %v1072_v34 = vpop.f32.mrb[17].mxu0 }
 0x192   : > { %v1073_v58 = vpop.f32.mrb[18].mxu0 }
 0x193   : > { %v1075_v25 = vpop.f32.mrb[19].mxu0 }
 0x194   : > { %v1242_v56 = vpop.f32.mrb[8].mxu1 }
 0x195   : > { %v4225_v63 = vadd.f32 %v1242_v56, %v1054_v15  ;;  %v1244_v11 = vpop.f32.mrb[9].mxu1  ;;  %v3129_v15 = vld [vmem:[%s5161_s4 + $0x88] sm:$0xff]  }
 0x196   : > { %v1245_v51 = vpop.f32.mrb[10].mxu1  ;;  %2087 = vmatpush1.bf16.msra.mxu1 %v3129_v15 }
 0x197   : > { %v4231_v29 = vadd.f32 %v1245_v51, %v1057_v26  ;;  %v1247_v55 = vpop.f32.mrb[11].mxu1  ;;  %2088 = vmatprep.subr.bf16.mxu1 %v5274_v37 }
 0x198   : > { %v1078_v9 = vpop.f32.mrb[20].mxu0  ;;  %v4277_v55 = vld [vmem:[%s5161_s4 + $0xe8] sm:$0xff]  }
 0x199   : > { %v1080_v16 = vpop.f32.mrb[21].mxu0  ;;  %5361 = vst [vmem:[#allocation40_spill] sm:$0xff] %v4277_v55 }
 0x19a   : > { %v1081_v27 = vpop.f32.mrb[22].mxu0  ;;  %2089 = vmatpush1.bf16.msra.mxu1 %v3130_v20 }
 0x19b   : > { %v1083_v26 = vpop.f32.mrb[23].mxu0  ;;  %2090 = vmatprep.subr.bf16.mxu1 %v5274_v37 }
 0x19c   : > { %v1250_v4 = vpop.f32.mrb[12].mxu1 }
 0x19d   : > { %v4245_v1 = vadd.f32 %v1250_v4, %v1062_v24  ;;  %v1252_v5 = vpop.f32.mrb[13].mxu1  ;;  %v3133_v24 = vld [vmem:[%s5161_s4 + $0x98] sm:$0xff]  }
 0x19e   : > { %v1253_v57 = vpop.f32.mrb[14].mxu1  ;;  %2091 = vmatpush1.bf16.msra.mxu1 %v3133_v24 }
 0x19f   : > { %v4253_v3 = vadd.f32 %v1253_v57, %v1065_v36  ;;  %v1255_v60 = vpop.f32.mrb[15].mxu1  ;;  %v4264_v36 = vld [vmem:[%s5161_s4 + $0xe0] sm:$0xff]   ;;  %2092 = vmatprep.subr.bf16.mxu1 %v5274_v37  ;;  %v3141_v57 = vld [vmem:[%s5161_s4 + $0xb0] sm:$0xff]  }
 0x1a0   : > { %v1086_v34 = vpop.f32.mrb[24].mxu0  ;;  %5360 = vst [vmem:[#allocation39_spill] sm:$0xff] %v4264_v36  ;;  %2461 = vmatpush1.bf16.msra.mxu0 %v4264_v36 }
 0x1a1   : > { %v1088_v33 = vpop.f32.mrb[25].mxu0  ;;  %2462 = vmatprep.subr.bf16.mxu0 %v5274_v37 }
 0x1a2   : > { %v1089_v25 = vpop.f32.mrb[26].mxu0  ;;  %2093 = vmatpush1.bf16.msra.mxu1 %v3136_v17 }
 0x1a3   : > { %v1091_v56 = vpop.f32.mrb[27].mxu0  ;;  %2094 = vmatprep.subr.bf16.mxu1 %v5274_v37 }
 0x1a4   : > { %v1258_v53 = vpop.f32.mrb[16].mxu1  ;;  %2463 = vmatpush1.bf16.msra.mxu0 %v4277_v55  ;;  %v4303_v56 = vld [vmem:[%s5161_s4 + $0xf8] sm:$0xff]  }
 0x1a5   : > { %v4270_v11 = vadd.f32 %v1258_v53, %v1070_v35  ;;  %v1260_v51 = vpop.f32.mrb[17].mxu1  ;;  %v3138_v35 = vld [vmem:[%s5161_s4 + $0xa8] sm:$0xff]   ;;  %2464 = vmatprep.subr.bf16.mxu0 %v5274_v37  ;;  %5363 = vst [vmem:[#allocation42_spill] sm:$0xff] %v4303_v56 }
 0x1a6   : > { %v1261_v59 = vpop.f32.mrb[18].mxu1  ;;  %2095 = vmatpush1.bf16.msra.mxu1 %v3138_v35 }
 0x1a7   : > { %v4279_v15 = vadd.f32 %v1261_v59, %v1073_v58  ;;  %v1263_v16 = vpop.f32.mrb[19].mxu1  ;;  %v4290_v58 = vld [vmem:[%s5161_s4 + $0xf0] sm:$0xff]   ;;  %2096 = vmatprep.subr.bf16.mxu1 %v5274_v37 }
 0x1a8   : > { %v1094_v38 = vpop.f32.mrb[28].mxu0  ;;  %5362 = vst [vmem:[#allocation41_spill] sm:$0xff] %v4290_v58  ;;  %2465 = vmatpush1.bf16.msra.mxu0 %v4290_v58 }
 0x1a9   : > { %v1096_v26 = vpop.f32.mrb[29].mxu0  ;;  %2466 = vmatprep.subr.bf16.mxu0 %v5274_v37 }
 0x1aa   : > { %v1097_v4 = vpop.f32.mrb[30].mxu0  ;;  %2097 = vmatpush1.bf16.msra.mxu1 %v3141_v57 }
 0x1ab   : > { %v1099_v20 = vpop.f32.mrb[31].mxu0  ;;  %2098 = vmatprep.subr.bf16.mxu1 %v5274_v37 }
 0x1ac   : > { %v1266_v5 = vpop.f32.mrb[20].mxu1  ;;  %2467 = vmatpush1.bf16.msra.mxu0 %v4303_v56 }
 0x1ad   : > { %v4296_v60 = vadd.f32 %v1266_v5, %v1078_v9  ;;  %v1268_v24 = vpop.f32.mrb[21].mxu1  ;;  %v3144_v9 = vld [vmem:[%s5161_s4 + $0xb8] sm:$0xff]   ;;  %2468 = vmatprep.subr.bf16.mxu0 %v5274_v37 }
 0x1ae   : > { %v1269_v33 = vpop.f32.mrb[22].mxu1  ;;  %2099 = vmatpush1.bf16.msra.mxu1 %v3144_v9  ;;  %v4326_v24 = vld [vmem:[%s5161_s4 + $0x108] sm:$0xff]  }
 0x1af   : > { %v4305_v53 = vadd.f32 %v1269_v33, %v1081_v27  ;;  %v1271_v17 = vpop.f32.mrb[23].mxu1  ;;  %v4316_v27 = vld [vmem:[%s5161_s4 + $0x100] sm:$0xff]   ;;  %2248 = vmatprep.subr.bf16.mxu1 %v5274_v37  ;;  %5365 = vst [vmem:[#allocation44_spill] sm:$0xff] %v4326_v24 }
 0x1b0   : > { %v1102_v51 = vpop.f32.mrb[32].mxu0  ;;  %5364 = vst [vmem:[#allocation43_spill] sm:$0xff] %v4316_v27  ;;  %2469 = vmatpush1.bf16.msra.mxu0 %v4316_v27 }
 0x1b1   : > { %v1104_v59 = vpop.f32.mrb[33].mxu0  ;;  %2470 = vmatprep.subr.bf16.mxu0 %v5274_v37 }
 0x1b2   : > { %v1105_v16 = vpop.f32.mrb[34].mxu0 }
 0x1b3   : > { %v1107_v35 = vpop.f32.mrb[35].mxu0 }
 0x1b4   : > { %v1274_v26 = vpop.f32.mrb[24].mxu1  ;;  %2471 = vmatpush1.bf16.msra.mxu0 %v4326_v24 }
 0x1b5   : > { %v4319_v20 = vadd.f32 %v1274_v26, %v1086_v34  ;;  %v1276_v5 = vpop.f32.mrb[25].mxu1  ;;  %2472 = vmatprep.subr.bf16.mxu0 %v5274_v37 }
 0x1b6   : > { %v1277_v57 = vpop.f32.mrb[26].mxu1 }
 0x1b7   : > { %v4328_v33 = vadd.f32 %v1277_v57, %v1089_v25  ;;  %v1279_v17 = vpop.f32.mrb[27].mxu1 }
 0x1b8   : > { %v4331_v59 = vpop.f32.mrb[36].mxu0  ;;  %2473 = vmatpush1.bf16.msra.mxu0 %v4367_v49 }
 0x1b9   : > { %v1112_v34 = vpop.f32.mrb[37].mxu0  ;;  %2474 = vmatprep.subr.bf16.mxu0 %v5274_v37 }
 0x1ba   : > { %v4333_v9 = vpop.f32.mrb[38].mxu0  ;;  %v4344_v34 = vld [vmem:[%s5160_s3] ss:$0 sm:$0xff] }
 0x1bb   : > { %v1115_v35 = vpop.f32.mrb[39].mxu0 }
 0x1bc   : > { %v1282_v26 = vpop.f32.mrb[28].mxu1 }
 0x1bd   : > { %v4337_v5 = vadd.f32 %v1282_v26, %v1094_v38  ;;  %v1284_v27 = vpop.f32.mrb[29].mxu1 }
 0x1be   : > { %v1285_v56 = vpop.f32.mrb[30].mxu1 }
 0x1bf   : > { %v4339_v25 = vadd.f32 %v1285_v56, %v1097_v4  ;;  %v1287_v57 = vpop.f32.mrb[31].mxu1 }
 0x1c0   : > { %v1446_v17 = vpop.f32.mrb[40].mxu0 }
 0x1c1   : > { %v1525_v58 = vadd.f32 %v1446_v17, %v4183_v43  ;;  %v1448_v38 = vpop.f32.mrb[41].mxu0 }
 0x1c2   : > { %v1449_v27 = vpop.f32.mrb[42].mxu0 }
 0x1c3   : > { %v1552_v4 = vadd.f32 %v4344_v34, %v1525_v58  ;;  %v1526_v56 = vadd.f32 %v1449_v27, %v4185_v45  ;;  %v1451_v35 = vpop.f32.mrb[43].mxu0 }
 0x1c4   : > { %v1290_v43 = vpop.f32.mrb[32].mxu1 }
 0x1c5   : > { %v1572_v26 = vmax.f32 %v1552_v4, 0.0  ;;  %v1553_v57 = vadd.f32 %v4344_v34, %v1526_v56  ;;  %v4358_v17 = vadd.f32 %v1290_v43, %v1102_v51  ;;  %v1292_v38 = vpop.f32.mrb[33].mxu1 }
 0x1c6   : > { %v1293_v24 = vpop.f32.mrb[34].mxu1 }
 0x1c7   : > { %v4360_v58 = vsel %vm1638_vm7, %v1572_v26, 0.0  ;;  %v1573_v45 = vmax.f32 %v1553_v57, 0.0  ;;  %v4362_v27 = vadd.f32 %v1293_v24, %v1105_v16  ;;  %v1295_v55 = vpop.f32.mrb[35].mxu1  ;;  %vm5367_vm7 = vcmp.lt.s32.totalorder %v3443_v23, 1 }
 0x1c8   : > { %v1454_v35 = vpop.f32.mrb[44].mxu0  ;;  %v5225_v51 = vrot.slane %v4360_v58, 7  ;;  %v5229_v55 = vrot.slane %v4360_v58, 1 }
 0x1c9   : > { %v4372_v4 = vsel %vm1639_vm15, %v1573_v45, 0.0  ;;  %v1527_v56 = vadd.f32 %v1454_v35, %v4195_v46  ;;  %v1456_v16 = vpop.f32.mrb[45].mxu0  ;;  %v4387_v46 = vld [vmem:[%s5161_s4 + $0x118] sm:$0xff]   ;;  %vm1600_vm15 = vcmp.ge.s32.totalorder %v3507_v54, %v4191_v21 }
 0x1ca   : > { %v1719_v24 = vrot.slane %v4372_v4, 7  ;;  %v1779_v43 = vrot.slane %v4372_v4, 1  ;;  %v1457_v26 = vpop.f32.mrb[46].mxu0  ;;  %2475 = vmatpush1.bf16.msra.mxu0 %v4387_v46  ;;  %vm1641_vm1 = vmand %vm1600_vm15, %vm1621_vm14  ;;  %vm1623_vm14 = vcmp.lt.s32.totalorder %v3718_v61, %v4193_v2  ;;  %vm5372_vm15 = vcmp.lt.s32.totalorder %v3443_v23, 1 }
 0x1cb   : > { %v1554_v38 = vadd.f32 %v4344_v34, %v1527_v56  ;;  %v1528_v45 = vadd.f32 %v1457_v26, %v4206_v50  ;;  %v1459_v35 = vpop.f32.mrb[47].mxu0 }
 0x1cc   : > { %v1298_v16 = vpop.f32.mrb[36].mxu1  ;;  %v4405_v50 = vsel %vm5367_vm7, %v5225_v51, %v1719_v24  ;;  %v1816_v54 = vsel %vm5368_vm0, %v5229_v55, %v1779_v43  ;;  %vm1601_vm0 = vcmp.ge.s32.totalorder %v3721_v0, %v4191_v21 }
 0x1cd   : > { %v1574_v56 = vmax.f32 %v1554_v38, 0.0  ;;  %v1555_v26 = vadd.f32 %v4344_v34, %v1528_v45  ;;  %v4413_v35 = vadd.f32 %v1298_v16, %v4331_v59  ;;  %v1300_v8 = vpop.f32.mrb[37].mxu1 }
 0x1ce   : > { %v1301_v57 = vpop.f32.mrb[38].mxu1 }
 0x1cf   : > { %v1700_v49 = vsel %vm1640_vm3, %v1574_v56, 0.0  ;;  %v1575_v36 = vmax.f32 %v1555_v26, 0.0  ;;  %v4417_v51 = vadd.f32 %v1301_v57, %v4333_v9  ;;  %v1303_v12 = vpop.f32.mrb[39].mxu1  ;;  %vm5369_vm3 = vmmov %vm5367_vm7  ;;  %vm5370_vm7 = vcmp.lt.s32.totalorder %v3443_v23, 7 }
 0x1d0   : > { %v1720_v37 = vrot.slane %v1700_v49, 7  ;;  %v1780_v62 = vrot.slane %v1700_v49, 1  ;;  %v1462_v55 = vpop.f32.mrb[48].mxu0 }
 0x1d1   : > { %v1701_v59 = vsel %vm1641_vm1, %v1575_v36, 0.0  ;;  %v1529_v38 = vadd.f32 %v1462_v55, %v4225_v63  ;;  %v1464_v45 = vpop.f32.mrb[49].mxu0  ;;  %vm1642_vm1 = vmand %vm1601_vm0, %vm1622_vm6  ;;  %vm1624_vm6 = vcmp.lt.s32.totalorder %v3749_v32, %v4193_v2 }
 0x1d2   : > { %v1721_v12 = vrot.slane %v1701_v59, 7  ;;  %v1781_v9 = vrot.slane %v1701_v59, 1  ;;  %v1465_v57 = vpop.f32.mrb[50].mxu0  ;;  %v1849_v16 = vpack.c.bf16 %v1701_v59, %v1700_v49  ;;  %v1755_v56 = vsel %vm5369_vm3, %v1719_v24, %v1720_v37  ;;  %vm5371_vm3 = vmmov %vm5370_vm7 }
 0x1d3   : > { %v1556_v26 = vadd.f32 %v4344_v34, %v1529_v38  ;;  %v1530_v36 = vadd.f32 %v1465_v57, %v4231_v29  ;;  %v1467_v8 = vpop.f32.mrb[51].mxu0  ;;  %v1760_v63 = vsel %vm3582_vm4, %v1755_v56, 0.0  ;;  %v1815_v55 = vsel %vm5370_vm7, %v1779_v43, %v1780_v62  ;;  %vm5374_vm7 = vmmov %vm5371_vm3 }
 0x1d4   : > { %1878 = vrot.lane.b32.xlu0 %v1849_v16, %s3260_s20  ;;  %v1814_v49 = vsel %vm5371_vm3, %v1780_v62, %v1781_v9  ;;  %v1754_v29 = vsel %vm5372_vm15, %v1720_v37, %v1721_v12  ;;  %v1819_v31 = vsel %vm3651_vm5, %v1815_v55, 0.0  ;;  %vm5373_vm4 = vcmp.ge.s32.totalorder %v3718_v61, %v4191_v21 }
 0x1d5   : > { %v1576_v24 = vmax.f32 %v1556_v26, 0.0  ;;  %v1557_v43 = vadd.f32 %v4344_v34, %v1530_v36  ;;  %v4450_v59 = vpack.c.bf16 %v1754_v29, %v1760_v63  ;;  %v4452_v38 = vpack.c.bf16 %v1819_v31, %v1816_v54  ;;  %vm1643_vm0 = vmand %vm5373_vm4, %vm1623_vm14 }
 0x1d6   : > { %vm1603_vm5 = vcmp.ge.s32.totalorder %v3749_v32, %v4191_v21  ;;  %vm1604_vm15 = vcmp.ge.s32.totalorder %v3735_v18, %v4191_v21  ;;  %vm1625_vm14 = vcmp.lt.s32.totalorder %v3735_v18, %v4193_v2  ;;  %vm5376_vm4 = vmmov %vm5374_vm7 }
 0x1d7   : > { %v1702_v62 = vsel %vm1642_vm1, %v1576_v24, 0.0  ;;  %v1577_v0 = vmax.f32 %v1557_v43, 0.0  ;;  %vm5375_vm1 = vcmp.lt.s32.totalorder %v3443_v23, 1  ;;  %vm1644_vm3 = vmand %vm1603_vm5, %vm1624_vm6  ;;  %vm5378_vm5 = vcmask 523264   ;;  %v3149_v23 = vld [vmem:[%s5161_s4 + $0x8] sm:$0xff]  }
 0x1d8   : > { %v1722_v37 = vrot.slane %v1702_v62, 7  ;;  %v1782_v45 = vrot.slane %v1702_v62, 1  ;;  %v1470_v6 = vpop.f32.mrb[52].mxu0  ;;  %vm1626_vm6 = vcmp.lt.s32.totalorder %v3804_v40, %v4193_v2 }
 0x1d9   : > { %v1703_v54 = vsel %vm1643_vm0, %v1577_v0, 0.0  ;;  %v1531_v57 = vadd.f32 %v1470_v6, %v4245_v1  ;;  %v1472_v16 = vpop.f32.mrb[53].mxu0  ;;  %vm5377_vm0 = vmmov %vm5375_vm1 }
 0x1da   : > { %v1723_v61 = vrot.slane %v1703_v54, 7  ;;  %v1783_v56 = vrot.slane %v1703_v54, 1  ;;  %v1473_v26 = vpop.f32.mrb[54].mxu0  ;;  %v1850_v36 = vpack.c.bf16 %v1703_v54, %v1702_v62  ;;  %v1813_v8 = vsel %vm5374_vm7, %v1781_v9, %v1782_v45  ;;  %vm5379_vm7 = vmmov %vm5376_vm4 }
 0x1db   : > { %v1558_v63 = vadd.f32 %v4344_v34, %v1531_v57  ;;  %v1532_v55 = vadd.f32 %v1473_v26, %v4253_v3  ;;  %v1475_v29 = vpop.f32.mrb[55].mxu0  ;;  %v1821_v1 = vsel %vm3551_vm2, %v1813_v8, 0.0  ;;  %v1753_v31 = vsel %vm5375_vm1, %v1721_v12, %v1722_v37  ;;  %vm1645_vm2 = vmand %vm1604_vm15, %vm1625_vm14 }
 0x1dc   : > { %1880 = vrot.lane.b32.xlu1 %v1850_v36, %s3260_s20  ;;  %v4484_v9 = vpack.c.bf16 %v1821_v1, %v1814_v49  ;;  %v1812_v3 = vsel %vm5376_vm4, %v1782_v45, %v1783_v56  ;;  %v1752_v10 = vsel %vm5377_vm0, %v1722_v37, %v1723_v61  ;;  %v1762_v12 = vsel %vm3743_vm9, %v1753_v31, 0.0  ;;  %vm5380_vm1 = vmmov %vm5377_vm0 }
 0x1dd   : > { %v1578_v24 = vmax.f32 %v1558_v63, 0.0  ;;  %v1559_v43 = vadd.f32 %v4344_v34, %v1532_v55  ;;  %v4493_v62 = vpack.c.bf16 %v1752_v10, %v1762_v12  ;;  %vm1605_vm9 = vcmp.ge.s32.totalorder %v3804_v40, %v4191_v21 }
 0x1de   : > { %2900 = vmatprep.mubr.msk.bf16.mxu1 %vm5378_vm5, %v4484_v9  ;;  %vm1606_vm15 = vcmp.ge.s32.totalorder %v3780_v13, %v4191_v21  ;;  %vm1627_vm14 = vcmp.lt.s32.totalorder %v3780_v13, %v4193_v2  ;;  %v5382_v13 = vld [vmem:[#allocation27_spill] sm:$0xff] }
 0x1df   : > { %v1704_v32 = vsel %vm1644_vm3, %v1578_v24, 0.0  ;;  %v1579_v49 = vmax.f32 %v1559_v43, 0.0  ;;  %vm1646_vm3 = vmand %vm1605_vm9, %vm1626_vm6  ;;  %vm1608_vm9 = vcmp.ge.s32.totalorder %v5382_v13, %v4191_v21  ;;  %vm1629_vm6 = vcmp.lt.s32.totalorder %v5382_v13, %v4193_v2 }
 0x1e0   : > { %v1724_v0 = vrot.slane %v1704_v32, 7  ;;  %v1784_v28 = vrot.slane %v1704_v32, 1  ;;  %v1478_v37 = vpop.f32.mrb[56].mxu0 }
 0x1e1   : > { %v1705_v45 = vsel %vm1645_vm2, %v1579_v49, 0.0  ;;  %v1533_v6 = vadd.f32 %v1478_v37, %v4270_v11  ;;  %v1480_v54 = vpop.f32.mrb[57].mxu0  ;;  %vm5381_vm2 = vmmov %vm5378_vm5  ;;  %vm1628_vm5 = vcmp.lt.s32.totalorder %v3849_v47, %v4193_v2 }
 0x1e2   : > { %v1725_v18 = vrot.slane %v1705_v45, 7  ;;  %v1785_v57 = vrot.slane %v1705_v45, 1  ;;  %v1481_v16 = vpop.f32.mrb[58].mxu0  ;;  %v1851_v26 = vpack.c.bf16 %v1705_v45, %v1704_v32  ;;  %v1811_v36 = vsel %vm5379_vm7, %v1783_v56, %v1784_v28 }
 0x1e3   : > { %v1560_v8 = vadd.f32 %v4344_v34, %v1533_v6  ;;  %v1534_v63 = vadd.f32 %v1481_v16, %v4279_v15  ;;  %v1483_v55 = vpop.f32.mrb[59].mxu0  ;;  %v1823_v11 = vsel %vm3727_vm8, %v1811_v36, 0.0  ;;  %v1751_v29 = vsel %vm5380_vm1, %v1723_v61, %v1724_v0  ;;  %vm1647_vm8 = vmand %vm1606_vm15, %vm1627_vm14 }
 0x1e4   : > { %1882 = vrot.lane.b32.xlu0 %v1851_v26, %s3260_s20  ;;  %v4527_v56 = vpack.c.bf16 %v1823_v11, %v1812_v3  ;;  %v1810_v15 = vsel %vm5376_vm4, %v1784_v28, %v1785_v57  ;;  %v1750_v7 = vsel %vm5377_vm0, %v1724_v0, %v1725_v18  ;;  %v1764_v61 = vsel %vm3794_vm11, %v1751_v29, 0.0  ;;  %vm5383_vm15 = vmmov %vm5376_vm4 }
 0x1e5   : > { %v1580_v1 = vmax.f32 %v1560_v8, 0.0  ;;  %v1561_v31 = vadd.f32 %v4344_v34, %v1534_v63  ;;  %v4536_v10 = vpack.c.bf16 %v1750_v7, %v1764_v61  ;;  %vm1607_vm11 = vcmp.ge.s32.totalorder %v3849_v47, %v4191_v21  ;;  %vm5385_vm14 = vmmov %vm5377_vm0 }
 0x1e6   : > { %2964 = vmatprep.mubr.msk.bf16.mxu0 %vm5381_vm2, %v4527_v56  ;;  %vm1648_vm7 = vmand %vm1607_vm11, %vm1628_vm5 }
 0x1e7   : > { %v1706_v40 = vsel %vm1646_vm3, %v1580_v1, 0.0  ;;  %v1581_v3 = vmax.f32 %v1561_v31, 0.0  ;;  %vm5386_vm1 = vmmov %vm5376_vm4  ;;  %vm1630_vm4 = vcmp.lt.s32.totalorder %v3908_v48, %v4193_v2 }
 0x1e8   : > { %v1726_v12 = vrot.slane %v1706_v40, 7  ;;  %v1786_v42 = vrot.slane %v1706_v40, 1  ;;  %v1486_v24 = vpop.f32.mrb[60].mxu0  ;;  %vm5387_vm3 = vmmov %vm5377_vm0  ;;  %vm1610_vm0 = vcmp.ge.s32.totalorder %v3882_v52, %v4191_v21 }
 0x1e9   : > { %v1707_v43 = vsel %vm1647_vm8, %v1581_v3, 0.0  ;;  %v1535_v32 = vadd.f32 %v1486_v24, %v4296_v60  ;;  %v1488_v49 = vpop.f32.mrb[61].mxu0  ;;  %vm1631_vm8 = vcmp.lt.s32.totalorder %v3882_v52, %v4193_v2  ;;  %vm5389_vm2 = vmmov %vm5386_vm1 }
 0x1ea   : > { %v1727_v0 = vrot.slane %v1707_v43, 7  ;;  %v1787_v28 = vrot.slane %v1707_v43, 1  ;;  %v1489_v37 = vpop.f32.mrb[62].mxu0  ;;  %v1852_v45 = vpack.c.bf16 %v1707_v43, %v1706_v40  ;;  %v1809_v6 = vsel %vm5383_vm15, %v1785_v57, %v1786_v42  ;;  %vm5391_vm11 = vmmov %vm5387_vm3 }
 0x1eb   : > { %v1562_v54 = vadd.f32 %v4344_v34, %v1535_v32  ;;  %v1536_v16 = vadd.f32 %v1489_v37, %v4305_v53  ;;  %v1491_v26 = vpop.f32.mrb[63].mxu0  ;;  %v1825_v36 = vsel %vm3773_vm10, %v1809_v6, 0.0  ;;  %v1749_v8 = vsel %vm5385_vm14, %v1725_v18, %v1726_v12  ;;  %vm1649_vm10 = vmand %vm1608_vm9, %vm1629_vm6 }
 0x1ec   : > { %1884 = vrot.lane.b32.xlu1 %v1852_v45, %s3260_s20  ;;  %v4570_v57 = vpack.c.bf16 %v1825_v36, %v1810_v15  ;;  %v1808_v53 = vsel %vm5386_vm1, %v1786_v42, %v1787_v28  ;;  %v1748_v63 = vsel %vm5387_vm3, %v1726_v12, %v1727_v0  ;;  %v1766_v18 = vsel %vm3851_vm13, %v1749_v8, 0.0  ;;  %vm5392_vm9 = vmmov %vm5386_vm1 }
 0x1ed   : > { %v1582_v11 = vmax.f32 %v1562_v54, 0.0  ;;  %v1563_v29 = vadd.f32 %v4344_v34, %v1536_v16  ;;  %v4579_v7 = vpack.c.bf16 %v1748_v63, %v1766_v18  ;;  %vm1609_vm13 = vcmp.ge.s32.totalorder %v3908_v48, %v4191_v21  ;;  %vm5393_vm6 = vmmov %vm5387_vm3 }
 0x1ee   : > { %vm1650_vm5 = vmand %vm1609_vm13, %vm1630_vm4  ;;  %vm1611_vm14 = vcmp.ge.s32.totalorder %v3958_v30, %v4191_v21 }
 0x1ef   : > { %v1708_v47 = vsel %vm1648_vm7, %v1582_v11, 0.0  ;;  %v1583_v15 = vmax.f32 %v1563_v29, 0.0  ;;  %vm1651_vm15 = vmand %vm1610_vm0, %vm1631_vm8  ;;  %vm1632_vm7 = vcmp.lt.s32.totalorder %v3958_v30, %v4193_v2  ;;  %v5395_v29 = vld [vmem:[#allocation31_spill] sm:$0xff] }
 0x1f0   : > { %v1728_v61 = vrot.slane %v1708_v47, 7  ;;  %v1788_v1 = vrot.slane %v1708_v47, 1  ;;  %v1494_v31 = vpop.f32.mrb[64].mxu0  ;;  %vm1612_vm1 = vcmp.ge.s32.totalorder %v5395_v29, %v4191_v21  ;;  %vm1633_vm3 = vcmp.lt.s32.totalorder %v5395_v29, %v4193_v2  ;;  %vm5399_vm4 = vmmov %vm5393_vm6 }
 0x1f1   : > { %v1709_v40 = vsel %vm1649_vm10, %v1583_v15, 0.0  ;;  %v1537_v3 = vadd.f32 %v1494_v31, %v4319_v20  ;;  %v1496_v12 = vpop.f32.mrb[65].mxu0  ;;  %vm5396_vm10 = vmmov %vm5389_vm2 }
 0x1f2   : > { %v1729_v42 = vrot.slane %v1709_v40, 7  ;;  %v1789_v24 = vrot.slane %v1709_v40, 1  ;;  %v1497_v43 = vpop.f32.mrb[66].mxu0  ;;  %v1853_v32 = vpack.c.bf16 %v1709_v40, %v1708_v47  ;;  %v1807_v49 = vsel %vm5389_vm2, %v1787_v28, %v1788_v1  ;;  %vm1652_vm0 = vmand %vm1611_vm14, %vm1632_vm7 }
 0x1f3   : > { %v1564_v13 = vadd.f32 %v4344_v34, %v1537_v3  ;;  %v1538_v37 = vadd.f32 %v1497_v43, %v4328_v33  ;;  %v1499_v45 = vpop.f32.mrb[67].mxu0  ;;  %v1827_v6 = vsel %vm3822_vm12, %v1807_v49, 0.0  ;;  %v1747_v54 = vsel %vm5391_vm11, %v1727_v0, %v1728_v61  ;;  %vm5400_vm8 = vmmov %vm5389_vm2  ;;  %v5402_v49 = vld [vmem:[#allocation32_spill] sm:$0xff] }
 0x1f4   : > { %1886 = vrot.lane.b32.xlu0 %v1853_v32, %s3260_s20  ;;  %v4611_v28 = vpack.c.bf16 %v1827_v6, %v1808_v53  ;;  %v1806_v33 = vsel %vm5392_vm9, %v1788_v1, %v1789_v24  ;;  %v1746_v16 = vsel %vm5393_vm6, %v1728_v61, %v1729_v42  ;;  %vm5394_vm12 = vnez %v5282_v39  ;;  %vm5401_vm2 = vmmov %vm5399_vm4 }
 0x1f5   : > { %v1768_v0 = vsel %vm5394_vm12, %v1747_v54, 0.0  ;;  %v1584_v26 = vmax.f32 %v1564_v13, 0.0  ;;  %v1565_v60 = vadd.f32 %v4344_v34, %v1538_v37  ;;  %vm5403_vm11 = vnez %v5402_v49  ;;  %vm5404_vm14 = vmmov %vm5400_vm8 }
 0x1f6   : > { %v4620_v36 = vpack.c.bf16 %v1746_v16, %v1768_v0  ;;  %vm1613_vm9 = vcmp.ge.s32.totalorder %v4010_v22, %v4191_v21  ;;  %vm1634_vm6 = vcmp.lt.s32.totalorder %v4010_v22, %v4193_v2  ;;  %vm1614_vm12 = vcmp.ge.s32.totalorder %v3986_v14, %v4191_v21 }
 0x1f7   : > { %v1710_v48 = vsel %vm1650_vm5, %v1584_v26, 0.0  ;;  %v1585_v8 = vmax.f32 %v1565_v60, 0.0  ;;  %vm1653_vm5 = vmand %vm1612_vm1, %vm1633_vm3 }
 0x1f8   : > { %v1730_v53 = vrot.slane %v1710_v48, 7  ;;  %v1790_v63 = vrot.slane %v1710_v48, 1  ;;  %v1502_v55 = vpop.f32.mrb[68].mxu0  ;;  %vm5407_vm1 = vmmov %vm5401_vm2 }
 0x1f9   : > { %v1711_v39 = vsel %vm1651_vm15, %v1585_v8, 0.0  ;;  %v1539_v18 = vadd.f32 %v1502_v55, %v4337_v5  ;;  %v1504_v11 = vpop.f32.mrb[69].mxu0  ;;  %v5397_v5 = vld [vmem:[#allocation29_spill] sm:$0xff]  ;;  %vm1635_vm15 = vcmp.lt.s32.totalorder %v3986_v14, %v4193_v2  ;;  %vm1654_vm3 = vmand %vm1613_vm9, %vm1634_vm6 }
 0x1fa   : > { %v1731_v52 = vrot.slane %v1711_v39, 7  ;;  %v1791_v47 = vrot.slane %v1711_v39, 1  ;;  %v1505_v15 = vpop.f32.mrb[70].mxu0  ;;  %v1854_v61 = vpack.c.bf16 %v1711_v39, %v1710_v48  ;;  %v1805_v1 = vsel %vm5396_vm10, %v1789_v24, %v1790_v63  ;;  %vm5408_vm10 = vmmov %vm5400_vm8 }
 0x1fb   : > { %v1566_v31 = vadd.f32 %v4344_v34, %v1539_v18  ;;  %v1540_v40 = vadd.f32 %v1505_v15, %v4339_v25  ;;  %v1507_v3 = vpop.f32.mrb[71].mxu0  ;;  %vm5398_vm13 = vnez %v5397_v5  ;;  %v1745_v43 = vsel %vm5399_vm4, %v1729_v42, %v1730_v53  ;;  %vm5417_vm9 = vmmov %vm5407_vm1 }
 0x1fc   : > { %v1829_v12 = vsel %vm5398_vm13, %v1805_v1, 0.0  ;;  %1888 = vrot.lane.b32.xlu1 %v1854_v61, %s3260_s20  ;;  %v1804_v25 = vsel %vm5400_vm8, %v1790_v63, %v1791_v47  ;;  %v1744_v32 = vsel %vm5401_vm2, %v1730_v53, %v1731_v52  ;;  %v1770_v42 = vsel %vm5403_vm11, %v1745_v43, 0.0  ;;  %vm5409_vm13 = vmmov %vm5407_vm1  ;;  %v5410_v61 = vld [vmem:[#allocation34_spill] sm:$0xff] }
 0x1fd   : > { %v4652_v24 = vpack.c.bf16 %v1829_v12, %v1806_v33  ;;  %v1586_v13 = vmax.f32 %v1566_v31, 0.0  ;;  %v1567_v37 = vadd.f32 %v4344_v34, %v1540_v40  ;;  %v4661_v45 = vpack.c.bf16 %v1744_v32, %v1770_v42  ;;  %vm5415_vm11 = vmmov %vm5407_vm1 }
 0x1fe   : > { %vm5411_vm4 = vnez %v5410_v61 }
 0x1ff   : > { %v1712_v30 = vsel %vm1652_vm0, %v1586_v13, 0.0  ;;  %v1587_v20 = vmax.f32 %v1567_v37, 0.0  ;;  %vm1655_vm0 = vmand %vm1614_vm12, %vm1635_vm15  ;;  %vm5420_vm12 = vnez %v5356_v41  ;;  %vm5421_vm15 = vnez %v5358_v19 }
 0x200   : > { %v1732_v6 = vrot.slane %v1712_v30, 7  ;;  %v1792_v54 = vrot.slane %v1712_v30, 1  ;;  %v1510_v33 = vpop.f32.mrb[72].mxu0 }
 0x201   : > { %v1713_v16 = vsel %vm1653_vm5, %v1587_v20, 0.0  ;;  %v1541_v0 = vadd.f32 %v1510_v33, %v4358_v17  ;;  %v1512_v26 = vpop.f32.mrb[73].mxu0  ;;  %v5405_v17 = vld [vmem:[#allocation30_spill] sm:$0xff]  ;;  %vm5416_vm5 = vmmov %vm5400_vm8 }
 0x202   : > { %v1733_v60 = vrot.slane %v1713_v16, 7  ;;  %v1793_v48 = vrot.slane %v1713_v16, 1  ;;  %v1513_v8 = vpop.f32.mrb[74].mxu0  ;;  %v1855_v53 = vpack.c.bf16 %v1713_v16, %v1712_v30  ;;  %v1803_v63 = vsel %vm5404_vm14, %v1791_v47, %v1792_v54  ;;  %v5418_v26 = vld [vmem:[#allocation36_spill] sm:$0xff]  ;;  %vm5422_vm14 = vmmov %vm5416_vm5 }
 0x203   : > { %v1568_v55 = vadd.f32 %v4344_v34, %v1541_v0  ;;  %v1542_v39 = vadd.f32 %v1513_v8, %v4362_v27  ;;  %v1515_v18 = vpop.f32.mrb[75].mxu0  ;;  %vm5406_vm7 = vnez %v5405_v17  ;;  %v1743_v29 = vsel %vm5407_vm1, %v1731_v52, %v1732_v6 }
 0x204   : > { %v1831_v11 = vsel %vm5406_vm7, %v1803_v63, 0.0  ;;  %1890 = vrot.lane.b32.xlu0 %v1855_v53, %s3260_s20  ;;  %v1802_v27 = vsel %vm5408_vm10, %v1792_v54, %v1793_v48  ;;  %v1742_v15 = vsel %vm5409_vm13, %v1732_v6, %v1733_v60  ;;  %v1772_v52 = vsel %vm5411_vm4, %v1743_v29, 0.0  ;;  %v5413_v54 = vld [vmem:[#allocation33_spill] sm:$0xff]  ;;  %vm5427_vm10 = vmmov %vm5407_vm1 }
 0x205   : > { %v4693_v47 = vpack.c.bf16 %v1831_v11, %v1804_v25  ;;  %v1588_v1 = vmax.f32 %v1568_v55, 0.0  ;;  %v1569_v31 = vadd.f32 %v4344_v34, %v1542_v39  ;;  %v4702_v40 = vpack.c.bf16 %v1742_v15, %v1772_v52  ;;  %v5423_v15 = vld [vmem:[#allocation35_spill] sm:$0xff] }
 0x206   : > { %v5412_v25 = vpack.c.bf16 %v4372_v4, %v4360_v58  ;;  %vm5414_vm2 = vnez %v5413_v54  ;;  %vm5419_vm6 = vnez %v5418_v26  ;;  %vm5424_vm7 = vnez %v5423_v15  ;;  %v3154_v54 = vld [vmem:[%s5161_s4 + $0x30] sm:$0xff]   ;;  %v3157_v26 = vld [vmem:[%s5161_s4 + $0x48] sm:$0xff]  }
 0x207   : > { %v1714_v22 = vsel %vm1654_vm3, %v1588_v1, 0.0  ;;  %v1589_v3 = vmax.f32 %v1569_v31, 0.0  ;;  %v5425_v52 = vrot.slane %v4360_v58, 7  ;;  %vm5426_vm3 = vmmov %vm5407_vm1  ;;  %vm5428_vm13 = vnez %v5326_v44 }
 0x208   : > { %v1734_v5 = vrot.slane %v1714_v22, 7  ;;  %v1794_v12 = vrot.slane %v1714_v22, 1  ;;  %v1518_v43 = vpop.f32.mrb[76].mxu0  ;;  %1876 = vrot.lane.b32.xlu0 %v5412_v25, %s3260_s20 }
 0x209   : > { %v1715_v32 = vsel %vm1655_vm0, %v1589_v3, 0.0  ;;  %v1543_v49 = vadd.f32 %v1518_v43, %v4413_v35  ;;  %v1520_v42 = vpop.f32.mrb[77].mxu0  ;;  %vm5431_vm0 = vmmov %vm5416_vm5  ;;  %v5432_v43 = vrot.slane %v4360_v58, 1  ;;  %v5438_v58 = vmov 0  }
 0x20a   : > { %v1735_v13 = vrot.slane %v1715_v32, 7  ;;  %v1795_v2 = vrot.slane %v1715_v32, 1  ;;  %v1521_v37 = vpop.f32.mrb[78].mxu0  ;;  %v1856_v30 = vpack.c.bf16 %v1715_v32, %v1714_v22  ;;  %v1801_v14 = vsel %vm5400_vm8, %v1793_v48, %v1794_v12  ;;  %v5429_v22 = vld [vmem:[#allocation24_spill] sm:$0xff]  ;;  %vm5433_vm8 = vmmov %vm5431_vm0 }
 0x20b   : > { %v1570_v21 = vadd.f32 %v4344_v34, %v1543_v49  ;;  %v1544_v20 = vadd.f32 %v1521_v37, %v4417_v51  ;;  %v1523_v6 = vpop.f32.mrb[79].mxu0  ;;  %v1833_v4 = vsel %vm5414_vm2, %v1801_v14, 0.0  ;;  %v1741_v33 = vsel %vm5415_vm11, %v1733_v60, %v1734_v5  ;;  %v5434_v49 = vld [vmem:[#allocation37_spill] sm:$0xff]  ;;  %v3151_v14 = vld [vmem:[%s5161_s4 + $0x18] sm:$0xff]  }
 0x20c   : > { %1949 = vrot.lane.b32.xlu1 %v1856_v30, %s3260_s20  ;;  %v4724_v35 = vpack.c.bf16 %v1833_v4, %v1802_v27  ;;  %v1800_v16 = vsel %vm5416_vm5, %v1794_v12, %v1795_v2  ;;  %v1740_v0 = vsel %vm5417_vm9, %v1734_v5, %v1735_v13  ;;  %v1774_v51 = vsel %vm5419_vm6, %v1741_v33, 0.0  ;;  %v3153_v6 = vld [vmem:[%s5161_s4 + $0x28] sm:$0xff]   ;;  %v3155_v33 = vld [vmem:[%s5161_s4 + $0x38] sm:$0xff]  }
 0x20d   : > { %v1590_v48 = vmax.f32 %v1570_v21, 0.0  ;;  %v1571_v8 = vadd.f32 %v4344_v34, %v1544_v20  ;;  %v4733_v53 = vpack.c.bf16 %v1740_v0, %v1774_v51  ;;  %vm5430_vm4 = vnez %v5429_v22  ;;  %v3158_v51 = vld [vmem:[%s5161_s4 + $0x50] sm:$0xff]  }
 0x20e   : > { %vm5435_vm2 = vnez %v5434_v49  ;;  %vm5436_vm11 = vcmask 523264  }
 0x20f   : > { %v1716_v60 = vsel %vm5420_vm12, %v1590_v48, 0.0  ;;  %v1591_v63 = vmax.f32 %v1571_v8, 0.0  ;;  %vm5437_vm5 = vmmov %vm5436_vm11  ;;  %v3159_v8 = vld [vmem:[%s5161_s4 + $0x58] sm:$0xff]  }
 0x210   : > { %v1736_v55 = vrot.slane %v1716_v60, 7  ;;  %v1796_v39 = vrot.slane %v1716_v60, 1  ;;  %vm5439_vm9 = vmmov %vm5437_vm5 }
 0x211   : > { %v1717_v18 = vsel %vm5421_vm15, %v1591_v63, 0.0  ;;  %vm5440_vm6 = vmmov %vm5437_vm5 }
 0x212   : > { %v1737_v17 = vrot.slane %v1717_v18, 7  ;;  %v1797_v11 = vrot.slane %v1717_v18, 1  ;;  %v1857_v29 = vpack.c.bf16 %v1717_v18, %v1716_v60  ;;  %v1799_v27 = vsel %vm5422_vm14, %v1795_v2, %v1796_v39  ;;  %vm5441_vm12 = vmmov %vm5437_vm5  ;;  %v3160_v18 = vld [vmem:[%s5161_s4 + $0xc0] sm:$0xff]  }
 0x213   : > { %v1835_v34 = vsel %vm5424_vm7, %v1799_v27, 0.0  ;;  %v1739_v61 = vsel %vm5407_vm1, %v1735_v13, %v1736_v55  ;;  %v3146_v13 = vld [vmem:[%s5161_s4] sm:$0xff]   ;;  %vm5442_vm15 = vmmov %vm5437_vm5 }
 0x214   : > { %2346 = vrot.lane.b32.xlu1 %v1857_v29, %s3260_s20  ;;  %v4746_v41 = vpack.c.bf16 %v1835_v34, %v1800_v16  ;;  %v1757_v19 = vsel %vm5426_vm3, %v1737_v17, %v5425_v52  ;;  %v1738_v1 = vsel %vm5427_vm10, %v1736_v55, %v1737_v17  ;;  %v1776_v31 = vsel %vm5428_vm13, %v1739_v61, 0.0  ;;  %vm5443_vm14 = vmmov %vm5437_vm5  ;;  %v3156_v16 = vld [vmem:[%s5161_s4 + $0x40] sm:$0xff]   ;;  %v5464_v17 = vld [vmem:[#allocation39_spill] sm:$0xff]  ;;  %s3261_s20 = smov [#allocation2]  }
 0x215   : > { %v1758_v3 = vsel %vm5430_vm4, %v1757_v19, 0.0  ;;  %v4758_v5 = vpack.c.bf16 %v1738_v1, %v1776_v31  ;;  %v1798_v12 = vsel %vm5431_vm0, %v1796_v39, %v1797_v11  ;;  %v1817_v25 = vsel %vm5433_vm8, %v1797_v11, %v5432_v43  ;;  %vm5444_vm7 = vmmov %vm5437_vm5  ;;  %v5467_v11 = vld [vmem:[#allocation41_spill] sm:$0xff]  ;;  %v5468_v29 = vld [vmem:[#allocation42_spill] sm:$0xff]  ;;  %s3167_s19 = sshll.u32 %s3261_s20, 4  ;;  %s3168_s19 = int_to_ptr.vmem [resolvable:$false] %s3167_s19 }
 0x216   : > { %v4767_v32 = vpack.c.bf16 %v4405_v50, %v1758_v3  ;;  %v1837_v44 = vsel %vm5435_vm2, %v1817_v25, 0.0  ;;  %vm5445_vm1 = vmmov %vm5437_vm5  ;;  %v5471_v27 = vld [vmem:[#allocation44_spill] sm:$0xff]  ;;  %s3169_s12 = scalar_lea.vmem %s3168_s19, 4096  ;;  %p3170_p7 = scmp.lt.s32.totalorder %s5099_s30, %s3168_s19 }
 0x217   : > { %v4771_v42 = vpack.c.bf16 %v1837_v44, %v1798_v12  ;;  %vm5446_vm3 = vmmov %vm5445_vm1  ;;  %p3171_p9 = scmp.lt.s32.totalorder %s3169_s12, %s3163_s16 }
 0x218   : > { %vm5447_vm10 = vmmov %vm5445_vm1 }
 0x219   : > { %vm5448_vm13 = vmmov %vm5445_vm1  ;;  %p3172_p10 = por %p3171_p9, %p3170_p7 }
 0x21a   : > { %vm5449_vm4 = vmmov %vm5445_vm1 }
 0x21b   : > { %vm5450_vm0 = vmmov %vm5445_vm1  ;;  %p3173_p11 = pnand %p3172_p10, %p3166_p6 }
 0x21c   : > { %vm5451_vm8 = vmmov %vm5450_vm0 }
 0x21d   : > { %vm5452_vm2 = vmmov %vm5450_vm0 }
 0x246   : > { %v1879_v2 = vpop.permute.xlu0 %1878 }
 0x247   : > { %v4778_v37 = vsel %vm5436_vm11, %v4450_v59, %v1879_v2  ;;  %v3150_v59 = vld [vmem:[%s5161_s4 + $0x10] sm:$0xff]   ;;  %vm5453_vm11 = vmmov %vm5450_vm0 }
 0x248   : > { %2109 = vmatmul.mubr.bf16.vlgmr.msra.gmra.mrb[40].mxu1 %v4778_v37 }
 0x249   : > { %2249 = vmatpush1.bf16.msra.mxu1 %v3146_v13  ;;  %2901 = vmatprep.mubr.msk.bf16.mxu1 %vm5437_vm5, %v4527_v56  ;;  %vm5454_vm5 = vmmov %vm5450_vm0 }
 0x24a   : > { %2250 = vmatprep.subr.bf16.mxu1 %v5438_v58 }
 0x24d   : > { %2251 = vmatpush1.bf16.msra.mxu1 %v3149_v23 }
 0x24e   : > { %v1881_v50 = vpop.permute.xlu1 %1880  ;;  %2252 = vmatprep.subr.bf16.mxu1 %v5438_v58 }
 0x24f   : > { %v4793_v30 = vsel %vm5439_vm9, %v4493_v62, %v1881_v50  ;;  %v3152_v62 = vld [vmem:[%s5161_s4 + $0x20] sm:$0xff]   ;;  %vm5455_vm9 = vmmov %vm5450_vm0 }
 0x250   : > { %2117 = vmatmul.mubr.bf16.gmra.mrb[44].mxu1 %v4793_v30  ;;  %2485 = vmatmul.mubr.bf16.vlgmr.msra.gmra.mrb[80].mxu0 %v4793_v30 }
 0x251   : > { %2902 = vmatprep.mubr.msk.bf16.mxu1 %vm5440_vm6, %v4570_v57  ;;  %2965 = vmatprep.mubr.msk.bf16.mxu0 %vm5441_vm12, %v4570_v57  ;;  %vm5456_vm6 = vmmov %vm5450_vm0 }
 0x252   : > { %2253 = vmatpush1.bf16.msra.mxu1 %v3150_v59  ;;  %vm5457_vm12 = vmmov %vm5450_vm0 }
 0x253   : > { %2254 = vmatprep.subr.bf16.mxu1 %v5438_v58 }
 0x256   : > { %v1883_v21 = vpop.permute.xlu0 %1882  ;;  %2255 = vmatpush1.bf16.msra.mxu1 %v3151_v14 }
 0x257   : > { %v4810_v20 = vsel %vm5442_vm15, %v4536_v10, %v1883_v21  ;;  %2256 = vmatprep.subr.bf16.mxu1 %v5438_v58  ;;  %vm5458_vm15 = vmmov %vm5450_vm0 }
 0x258   : > { %2125 = vmatmul.mubr.bf16.gmra.mrb[48].mxu1 %v4810_v20  ;;  %2493 = vmatmul.mubr.bf16.gmra.mrb[84].mxu0 %v4810_v20 }
 0x259   : > { %2903 = vmatprep.mubr.msk.bf16.mxu1 %vm5443_vm14, %v4611_v28  ;;  %2966 = vmatprep.mubr.msk.bf16.mxu0 %vm5444_vm7, %v4611_v28  ;;  %vm5459_vm14 = vmmov %vm5450_vm0 }
 0x25a   : > { %2257 = vmatpush1.bf16.msra.mxu1 %v3152_v62  ;;  %vm5460_vm7 = vmmov %vm5450_vm0 }
 0x25b   : > { %2258 = vmatprep.subr.bf16.mxu1 %v5438_v58 }
 0x25e   : > { %v1885_v10 = vpop.permute.xlu1 %1884  ;;  %2259 = vmatpush1.bf16.msra.mxu1 %v3153_v6 }
 0x25f   : > { %v4828_v4 = vsel %vm5445_vm1, %v4579_v7, %v1885_v10  ;;  %2260 = vmatprep.subr.bf16.mxu1 %v5438_v58  ;;  %vm5461_vm1 = vmmov %vm5450_vm0 }
 0x260   : > { %2133 = vmatmul.mubr.bf16.gmra.mrb[52].mxu1 %v4828_v4  ;;  %2501 = vmatmul.mubr.bf16.gmra.mrb[88].mxu0 %v4828_v4 }
 0x261   : > { %2904 = vmatprep.mubr.msk.bf16.mxu1 %vm5446_vm3, %v4652_v24  ;;  %2967 = vmatprep.mubr.msk.bf16.mxu0 %vm5447_vm10, %v4652_v24  ;;  %vm5463_vm3 = vmmov %vm5450_vm0 }
 0x262   : > { %2261 = vmatpush1.bf16.msra.mxu1 %v3154_v54  ;;  %vm5466_vm10 = vmmov %vm5450_vm0 }
 0x263   : > { %2262 = vmatprep.subr.bf16.mxu1 %v5438_v58 }
 0x266   : > { %v1887_v7 = vpop.permute.xlu0 %1886  ;;  %2263 = vmatpush1.bf16.msra.mxu1 %v3155_v33 }
 0x267   : > { %v4846_v0 = vsel %vm5448_vm13, %v4620_v36, %v1887_v7  ;;  %2264 = vmatprep.subr.bf16.mxu1 %v5438_v58  ;;  %vm5469_vm13 = vmmov %vm5450_vm0 }
 0x268   : > { %2141 = vmatmul.mubr.bf16.gmra.mrb[56].mxu1 %v4846_v0  ;;  %2509 = vmatmul.mubr.bf16.gmra.mrb[92].mxu0 %v4846_v0 }
 0x269   : > { %2905 = vmatprep.mubr.msk.bf16.mxu1 %vm5449_vm4, %v4693_v47  ;;  %2968 = vmatprep.mubr.msk.bf16.mxu0 %vm5450_vm0, %v4693_v47  ;;  %vm5472_vm4 = vmmov %vm5450_vm0 }
 0x26a   : > { %2265 = vmatpush1.bf16.msra.mxu1 %v3156_v16 }
 0x26b   : > { %2266 = vmatprep.subr.bf16.mxu1 %v5438_v58 }
 0x26e   : > { %v1889_v36 = vpop.permute.xlu1 %1888  ;;  %2267 = vmatpush1.bf16.msra.mxu1 %v3157_v26 }
 0x26f   : > { %v1918_v48 = vsel %vm5451_vm8, %v4661_v45, %v1889_v36  ;;  %2268 = vmatprep.subr.bf16.mxu1 %v5438_v58  ;;  %vm5474_vm8 = vmmov %vm5450_vm0 }
 0x270   : > { %2149 = vmatmul.mubr.bf16.gmra.mrb[60].mxu1 %v1918_v48  ;;  %2517 = vmatmul.mubr.bf16.gmra.mrb[96].mxu0 %v1918_v48 }
 0x271   : > { %2906 = vmatprep.mubr.msk.bf16.mxu1 %vm5452_vm2, %v4724_v35  ;;  %2969 = vmatprep.mubr.msk.bf16.mxu0 %vm5453_vm11, %v4724_v35  ;;  %vm5475_vm2 = vmmov %vm5450_vm0 }
 0x272   : > { %2269 = vmatpush1.bf16.msra.mxu1 %v3158_v51  ;;  %vm5478_vm11 = vmmov %vm5450_vm0 }
 0x273   : > { %2270 = vmatprep.subr.bf16.mxu1 %v5438_v58 }
 0x276   : > { %v1891_v60 = vpop.permute.xlu0 %1890  ;;  %2271 = vmatpush1.bf16.msra.mxu1 %v3159_v8 }
 0x277   : > { %v1922_v45 = vsel %vm5454_vm5, %v4702_v40, %v1891_v60  ;;  %2988 = vmatprep.subr.bf16.mxu1 %v5438_v58  ;;  %vm5479_vm5 = vmmov %vm5450_vm0 }
 0x278   : > { %2157 = vmatmul.mubr.bf16.gmra.mrb[64].mxu1 %v1922_v45  ;;  %2525 = vmatmul.mubr.bf16.gmra.mrb[100].mxu0 %v1922_v45 }
 0x279   : > { %2907 = vmatprep.mubr.msk.bf16.mxu1 %vm5455_vm9, %v4746_v41  ;;  %2970 = vmatprep.mubr.msk.bf16.mxu0 %vm5456_vm6, %v4746_v41  ;;  %vm5482_vm9 = vmmov %vm5450_vm0 }
 0x27a   : > { %v1877_v40 = vpop.permute.xlu0 %1876  ;;  %vm5483_vm6 = vmmov %vm5450_vm0 }
 0x27b   : > { %v1894_v39 = vsel %vm5459_vm14, %v4767_v32, %v1877_v40  ;;  %vm5490_vm14 = vmmov %vm5450_vm0 }
 0x27e   : > { %v1950_v63 = vpop.permute.xlu1 %1949 }
 0x27f   : > { %v1953_v55 = vsel %vm5457_vm12, %v4733_v53, %v1950_v63  ;;  %v3161_v53 = vld [vmem:[%s5161_s4 + $0xc8] sm:$0xff]   ;;  %vm5486_vm12 = vmmov %vm5450_vm0 }
 0x280   : > { %2165 = vmatmul.mubr.bf16.gmra.mrb[68].mxu1 %v1953_v55  ;;  %2533 = vmatmul.mubr.bf16.gmra.mrb[104].mxu0 %v1953_v55 }
 0x281   : > { %2920 = vmatprep.mubr.msk.bf16.mxu1 %vm5458_vm15, %v4452_v38  ;;  %v3162_v38 = vld [vmem:[%s5161_s4 + $0xd0] sm:$0xff]   ;;  %vm5487_vm15 = vmmov %vm5450_vm0 }
 0x288   : > { %2281 = vmatmul.mubr.bf16.vlgmr.msra.gmra.mrb[72].mxu1 %v1894_v39 }
 0x289   : > { %3000 = vmatpush1.bf16.msra.mxu1 %v3160_v18  ;;  %2921 = vmatprep.mubr.msk.bf16.mxu1 %vm5460_vm7, %v4484_v9  ;;  %v5462_v9 = vld [vmem:[#allocation38_spill] sm:$0xff]  ;;  %vm5491_vm7 = vmmov %vm5450_vm0 }
 0x28a   : > { %2989 = vmatprep.subr.bf16.mxu1 %v5438_v58 }
 0x28d   : > { %3001 = vmatpush1.bf16.msra.mxu1 %v3161_v53 }
 0x28e   : > { %2990 = vmatprep.subr.bf16.mxu1 %v5438_v58 }
 0x290   : > { %2289 = vmatmul.mubr.bf16.gmra.mrb[76].mxu1 %v4778_v37 }
 0x291   : > { %2922 = vmatprep.mubr.msk.bf16.mxu1 %vm5461_vm1, %v4527_v56  ;;  %3002 = vmatpush1.bf16.msra.mxu1 %v3162_v38  ;;  %v5465_v56 = vld [vmem:[#allocation40_spill] sm:$0xff]  ;;  %vm5494_vm1 = vmmov %vm5450_vm0 }
 0x292   : > { %2991 = vmatprep.subr.bf16.mxu1 %v5438_v58 }
 0x295   : > { %3003 = vmatpush1.bf16.msra.mxu1 %v5462_v9 }
 0x296   : > { %2992 = vmatprep.subr.bf16.mxu1 %v5438_v58 }
 0x298   : > { %2297 = vmatmul.mubr.bf16.gmra.mrb[80].mxu1 %v4793_v30 }
 0x299   : > { %2923 = vmatprep.mubr.msk.bf16.mxu1 %vm5463_vm3, %v4570_v57  ;;  %3004 = vmatpush1.bf16.msra.mxu1 %v5464_v17  ;;  %v5470_v57 = vld [vmem:[#allocation43_spill] sm:$0xff]  ;;  %vm5495_vm3 = vmmov %vm5450_vm0 }
 0x29a   : > { %2993 = vmatprep.subr.bf16.mxu1 %v5438_v58 }
 0x29d   : > { %3005 = vmatpush1.bf16.msra.mxu1 %v5465_v56 }
 0x29e   : > { %2994 = vmatprep.subr.bf16.mxu1 %v5438_v58 }
 0x2a0   : > { %2305 = vmatmul.mubr.bf16.gmra.mrb[84].mxu1 %v4810_v20 }
 0x2a1   : > { %2924 = vmatprep.mubr.msk.bf16.mxu1 %vm5466_vm10, %v4611_v28  ;;  %3006 = vmatpush1.bf16.msra.mxu1 %v5467_v11  ;;  %v5473_v28 = vld [vmem:[#allocation45_spill] sm:$0xff]  ;;  %vm5498_vm10 = vmmov %vm5450_vm0 }
 0x2a2   : > { %2995 = vmatprep.subr.bf16.mxu1 %v5438_v58 }
 0x2a5   : > { %3007 = vmatpush1.bf16.msra.mxu1 %v5468_v29 }
 0x2a6   : > { %2996 = vmatprep.subr.bf16.mxu1 %v5438_v58 }
 0x2a8   : > { %2313 = vmatmul.mubr.bf16.gmra.mrb[88].mxu1 %v4828_v4 }
 0x2a9   : > { %2925 = vmatprep.mubr.msk.bf16.mxu1 %vm5469_vm13, %v4652_v24  ;;  %3008 = vmatpush1.bf16.msra.mxu1 %v5470_v57  ;;  %v2347_v24 = vpop.permute.xlu1 %2346  ;;  %vm5499_vm13 = vmmov %vm5450_vm0 }
 0x2aa   : > { %2997 = vmatprep.subr.bf16.mxu1 %v5438_v58  ;;  %v2350_v15 = vsel %vm5475_vm2, %v4758_v5, %v2347_v24  ;;  %vm5506_vm2 = vmmov %vm5450_vm0 }
 0x2ad   : > { %3009 = vmatpush1.bf16.msra.mxu1 %v5471_v27 }
 0x2ae   : > { %2998 = vmatprep.subr.bf16.mxu1 %v5438_v58 }
 0x2b0   : > { %2321 = vmatmul.mubr.bf16.gmra.mrb[92].mxu1 %v4846_v0 }
 0x2b1   : > { %2926 = vmatprep.mubr.msk.bf16.mxu1 %vm5472_vm4, %v4693_v47  ;;  %3010 = vmatpush1.bf16.msra.mxu1 %v5473_v28  ;;  %vm5502_vm4 = vmmov %vm5450_vm0 }
 0x2b2   : > { %2999 = vmatprep.subr.bf16.mxu1 %v5438_v58 }
 0x2b5   : > { %3011 = vmatpush1.bf16.msra.mxu1 %v4387_v46 }
 0x2b8   : > { %2329 = vmatmul.mubr.bf16.gmra.mrb[96].mxu1 %v1918_v48 }
 0x2b9   : > { %2927 = vmatprep.mubr.msk.bf16.mxu1 %vm5450_vm0, %v4724_v35 }
 0x2c0   : > { %2337 = vmatmul.mubr.bf16.gmra.mrb[100].mxu1 %v1922_v45 }
 0x2c1   : > { %2971 = vmatprep.mubr.msk.bf16.mxu1 %vm5474_vm8, %v4771_v42  ;;  %vm5505_vm8 = vmmov %vm5450_vm0 }
 0x2c8   : > { %2541 = vmatmul.mubr.bf16.vlgmr.msra.gmra.mrb[104].mxu1 %v2350_v15 }
 0x31b   : > { %v2110_v47 = vpop.f32.mrb[40].mxu1 }
 0x31c   : > { %v2112_v34 = vpop.f32.mrb[41].mxu1 }
 0x31d   : > { %v4938_v61 = vpop.f32.mrb[42].mxu1 }
 0x31e   : > { %v2115_v41 = vpop.f32.mrb[43].mxu1 }
 0x323   : > { %v4940_v52 = vpop.f32.mrb[44].mxu1  ;;  %v2486_v46 = vpop.f32.mrb[80].mxu0 }
 0x324   : > { %v2120_v19 = vpop.f32.mrb[45].mxu1  ;;  %v2488_v1 = vpop.f32.mrb[81].mxu0 }
 0x325   : > { %v4942_v35 = vpop.f32.mrb[46].mxu1  ;;  %v2489_v31 = vpop.f32.mrb[82].mxu0  ;;  %v4999_v1 = vld [vmem:[%s5162_s5] ss:$0 sm:$0xff] }
 0x326   : > { %v2123_v22 = vpop.f32.mrb[47].mxu1  ;;  %v2491_v3 = vpop.f32.mrb[83].mxu0 }
 0x327   : > { %v5476_v22 = vld [vmem:[#allocation8_spill] sm:$0xff] }
 0x32b   : > { %v4944_v12 = vpop.f32.mrb[48].mxu1  ;;  %v4946_v43 = vpop.f32.mrb[84].mxu0 }
 0x32c   : > { %v2128_v5 = vpop.f32.mrb[49].mxu1  ;;  %v2496_v25 = vpop.f32.mrb[85].mxu0 }
 0x32d   : > { %v4948_v32 = vpop.f32.mrb[50].mxu1  ;;  %v4950_v49 = vpop.f32.mrb[86].mxu0 }
 0x32e   : > { %v2131_v44 = vpop.f32.mrb[51].mxu1  ;;  %v2499_v42 = vpop.f32.mrb[87].mxu0 }
 0x32f   : > { %v5477_v44 = vld [vmem:[#allocation9_spill] sm:$0xff] }
 0x333   : > { %v4952_v13 = vpop.f32.mrb[52].mxu1  ;;  %v4954_v2 = vpop.f32.mrb[88].mxu0 }
 0x334   : > { %v2136_v37 = vpop.f32.mrb[53].mxu1  ;;  %v2504_v23 = vpop.f32.mrb[89].mxu0 }
 0x335   : > { %v4956_v58 = vpop.f32.mrb[54].mxu1  ;;  %v4958_v50 = vpop.f32.mrb[90].mxu0 }
 0x336   : > { %v2139_v59 = vpop.f32.mrb[55].mxu1  ;;  %v2507_v30 = vpop.f32.mrb[91].mxu0 }
 0x33b   : > { %v4960_v14 = vpop.f32.mrb[56].mxu1  ;;  %v4962_v21 = vpop.f32.mrb[92].mxu0 }
 0x33c   : > { %v2144_v62 = vpop.f32.mrb[57].mxu1  ;;  %v2512_v20 = vpop.f32.mrb[93].mxu0 }
 0x33d   : > { %v4964_v6 = vpop.f32.mrb[58].mxu1  ;;  %v4966_v10 = vpop.f32.mrb[94].mxu0  ;;  %v5480_v62 = vld [vmem:[#allocation12_spill] sm:$0xff] }
 0x33e   : > { %v2147_v54 = vpop.f32.mrb[59].mxu1  ;;  %v2515_v4 = vpop.f32.mrb[95].mxu0 }
 0x343   : > { %v4968_v33 = vpop.f32.mrb[60].mxu1  ;;  %v4970_v7 = vpop.f32.mrb[96].mxu0 }
 0x344   : > { %v2152_v16 = vpop.f32.mrb[61].mxu1  ;;  %v2520_v0 = vpop.f32.mrb[97].mxu0 }
 0x345   : > { %v4972_v26 = vpop.f32.mrb[62].mxu1  ;;  %v4974_v36 = vpop.f32.mrb[98].mxu0  ;;  %v5481_v16 = vld [vmem:[#allocation14_spill] sm:$0xff] }
 0x346   : > { %v2155_v51 = vpop.f32.mrb[63].mxu1  ;;  %v2523_v48 = vpop.f32.mrb[99].mxu0 }
 0x34b   : > { %v4976_v8 = vpop.f32.mrb[64].mxu1  ;;  %v4978_v60 = vpop.f32.mrb[100].mxu0 }
 0x34c   : > { %v2160_v45 = vpop.f32.mrb[65].mxu1  ;;  %v2528_v63 = vpop.f32.mrb[101].mxu0 }
 0x34d   : > { %v4980_v55 = vpop.f32.mrb[66].mxu1  ;;  %v4982_v40 = vpop.f32.mrb[102].mxu0 }
 0x34e   : > { %v2163_v39 = vpop.f32.mrb[67].mxu1  ;;  %v2531_v18 = vpop.f32.mrb[103].mxu0 }
 0x34f   : > { %v5484_v39 = vld [vmem:[#allocation15_spill] sm:$0xff] }
 0x353   : > { %v4984_v53 = vpop.f32.mrb[68].mxu1  ;;  %v4986_v38 = vpop.f32.mrb[104].mxu0 }
 0x354   : > { %v2168_v9 = vpop.f32.mrb[69].mxu1  ;;  %v2536_v17 = vpop.f32.mrb[105].mxu0 }
 0x355   : > { %v4988_v56 = vpop.f32.mrb[70].mxu1  ;;  %v4990_v11 = vpop.f32.mrb[106].mxu0 }
 0x356   : > { %v2171_v29 = vpop.f32.mrb[71].mxu1  ;;  %v2539_v57 = vpop.f32.mrb[107].mxu0 }
 0x357   : > { %v5485_v29 = vld [vmem:[#allocation16_spill] sm:$0xff] }
 0x35b   : > { %v2282_v27 = vpop.f32.mrb[72].mxu1 }
 0x35c   : > { %v2283_v28 = vadd.f32 %v2282_v27, %v2110_v47  ;;  %v2284_v24 = vpop.f32.mrb[73].mxu1 }
 0x35d   : > { %v2285_v15 = vpop.f32.mrb[74].mxu1 }
 0x35e   : > { %v2549_v34 = vadd.f32 %v2486_v46, %v2283_v28  ;;  %v2286_v41 = vadd.f32 %v2285_v15, %v4938_v61  ;;  %v2287_v19 = vpop.f32.mrb[75].mxu1 }
 0x360   : > { %v2565_v3 = vadd.f32 %v2549_v34, %v5476_v22  ;;  %v2550_v5 = vadd.f32 %v2489_v31, %v2286_v41  ;;  %v5488_v34 = vld [vmem:[#allocation10_spill] sm:$0xff] }
 0x362   : > { %v2588_v25 = vadd.f32 %v4999_v1, %v2565_v3  ;;  %v2566_v47 = vadd.f32 %v2550_v5, %v5477_v44  ;;  %v5489_v3 = vld [vmem:[#allocation11_spill] sm:$0xff] }
 0x363   : > { %v2290_v42 = vpop.f32.mrb[76].mxu1 }
 0x364   : > { %2604 = vst.msk [vmem:[%s5004_s17] sm:$0xff] %vm5478_vm11, %v2588_v25  ;;  %v2589_v61 = vadd.f32 %v4999_v1, %v2566_v47  ;;  %v2291_v46 = vadd.f32 %v2290_v42, %v4940_v52  ;;  %v2292_v37 = vpop.f32.mrb[77].mxu1 }
 0x365   : > { %v2293_v23 = vpop.f32.mrb[78].mxu1 }
 0x366   : > { %2605 = vst.msk [vmem:[%s5004_s17 + $0x8] sm:$0xff] %vm5479_vm5, %v2589_v61  ;;  %v2551_v31 = vadd.f32 %v4946_v43, %v2291_v46  ;;  %v2294_v59 = vadd.f32 %v2293_v23, %v4942_v35  ;;  %v2295_v30 = vpop.f32.mrb[79].mxu1  ;;  %v5492_v61 = vld [vmem:[#allocation18_spill] sm:$0xff] }
 0x368   : > { %v2567_v20 = vadd.f32 %v2551_v31, %v5480_v62  ;;  %v2552_v54 = vadd.f32 %v4950_v49, %v2294_v59  ;;  %v5493_v31 = vld [vmem:[#allocation19_spill] sm:$0xff] }
 0x36a   : > { %v2590_v4 = vadd.f32 %v4999_v1, %v2567_v20  ;;  %v2568_v0 = vadd.f32 %v2552_v54, %v5481_v16 }
 0x36b   : > { %v2298_v52 = vpop.f32.mrb[80].mxu1 }
 0x36c   : > { %2606 = vst.msk [vmem:[%s5004_s17 + $0x10] sm:$0xff] %vm5482_vm9, %v2590_v4  ;;  %v2591_v51 = vadd.f32 %v4999_v1, %v2568_v0  ;;  %v2299_v48 = vadd.f32 %v2298_v52, %v4944_v12  ;;  %v2300_v43 = vpop.f32.mrb[81].mxu1  ;;  %v5496_v4 = vld [vmem:[#allocation13_spill] sm:$0xff] }
 0x36d   : > { %v2301_v35 = vpop.f32.mrb[82].mxu1 }
 0x36e   : > { %2607 = vst.msk [vmem:[%s5004_s17 + $0x18] sm:$0xff] %vm5483_vm6, %v2591_v51  ;;  %v2553_v45 = vadd.f32 %v4954_v2, %v2299_v48  ;;  %v2302_v49 = vadd.f32 %v2301_v35, %v4948_v32  ;;  %v2303_v63 = vpop.f32.mrb[83].mxu1  ;;  %v5497_v51 = vld [vmem:[#allocation17_spill] sm:$0xff] }
 0x36f   : > { %v5500_v63 = vld [vmem:[#allocation22_spill] sm:$0xff] }
 0x370   : > { %v2569_v18 = vadd.f32 %v2553_v45, %v5484_v39  ;;  %v2554_v9 = vadd.f32 %v4958_v50, %v2302_v49 }
 0x372   : > { %v2592_v17 = vadd.f32 %v4999_v1, %v2569_v18  ;;  %v2570_v57 = vadd.f32 %v2554_v9, %v5485_v29 }
 0x373   : > { %v2306_v12 = vpop.f32.mrb[84].mxu1 }
 0x374   : > { %2608 = vst.msk [vmem:[%s5004_s17 + $0x20] sm:$0xff] %vm5486_vm12, %v2592_v17  ;;  %v2593_v27 = vadd.f32 %v4999_v1, %v2570_v57  ;;  %v2307_v28 = vadd.f32 %v2306_v12, %v4952_v13  ;;  %v2308_v2 = vpop.f32.mrb[85].mxu1  ;;  %v5501_v17 = vld [vmem:[#allocation23_spill] sm:$0xff] }
 0x375   : > { %v2309_v32 = vpop.f32.mrb[86].mxu1 }
 0x376   : > { %2609 = vst.msk [vmem:[%s5004_s17 + $0x28] sm:$0xff] %vm5487_vm15, %v2593_v27  ;;  %v2555_v24 = vadd.f32 %v4962_v21, %v2307_v28  ;;  %v2310_v50 = vadd.f32 %v2309_v32, %v4956_v58  ;;  %v2311_v15 = vpop.f32.mrb[87].mxu1 }
 0x378   : > { %v2571_v41 = vadd.f32 %v2555_v24, %v5488_v34  ;;  %v2556_v19 = vadd.f32 %v4966_v10, %v2310_v50 }
 0x37a   : > { %v2594_v22 = vadd.f32 %v4999_v1, %v2571_v41  ;;  %v2572_v5 = vadd.f32 %v2556_v19, %v5489_v3  ;;  %v5504_v41 = vld [vmem:[#allocation21_spill] sm:$0xff] }
 0x37b   : > { %v2314_v13 = vpop.f32.mrb[88].mxu1 }
 0x37c   : > { %2610 = vst.msk [vmem:[%s5004_s17 + $0x30] sm:$0xff] %vm5490_vm14, %v2594_v22  ;;  %v2595_v25 = vadd.f32 %v4999_v1, %v2572_v5  ;;  %v2315_v44 = vadd.f32 %v2314_v13, %v4960_v14  ;;  %v2316_v21 = vpop.f32.mrb[89].mxu1 }
 0x37d   : > { %v2317_v58 = vpop.f32.mrb[90].mxu1 }
 0x37e   : > { %2611 = vst.msk [vmem:[%s5004_s17 + $0x38] sm:$0xff] %vm5491_vm7, %v2595_v25  ;;  %v2557_v47 = vadd.f32 %v4970_v7, %v2315_v44  ;;  %v2318_v10 = vadd.f32 %v2317_v58, %v4964_v6  ;;  %v2319_v42 = vpop.f32.mrb[91].mxu1 }
 0x380   : > { %v2573_v46 = vadd.f32 %v2557_v47, %v5492_v61  ;;  %v2558_v37 = vadd.f32 %v4974_v36, %v2318_v10 }
 0x382   : > { %v2596_v23 = vadd.f32 %v4999_v1, %v2573_v46  ;;  %v2574_v59 = vadd.f32 %v2558_v37, %v5493_v31 }
 0x383   : > { %v2322_v14 = vpop.f32.mrb[92].mxu1 }
 0x384   : > { %2612 = vst.msk [vmem:[%s5004_s17 + $0x40] sm:$0xff] %vm5494_vm1, %v2596_v23  ;;  %v2597_v30 = vadd.f32 %v4999_v1, %v2574_v59  ;;  %v2323_v62 = vadd.f32 %v2322_v14, %v4968_v33  ;;  %v2324_v7 = vpop.f32.mrb[93].mxu1 }
 0x385   : > { %v2325_v6 = vpop.f32.mrb[94].mxu1 }
 0x386   : > { %2613 = vst.msk [vmem:[%s5004_s17 + $0x48] sm:$0xff] %vm5495_vm3, %v2597_v30  ;;  %v2559_v20 = vadd.f32 %v4978_v60, %v2323_v62  ;;  %v2326_v36 = vadd.f32 %v2325_v6, %v4972_v26  ;;  %v2327_v54 = vpop.f32.mrb[95].mxu1 }
 0x388   : > { %v2575_v16 = vadd.f32 %v2559_v20, %v5496_v4  ;;  %v2560_v0 = vadd.f32 %v4982_v40, %v2326_v36 }
 0x38a   : > { %v2598_v52 = vadd.f32 %v4999_v1, %v2575_v16  ;;  %v2576_v48 = vadd.f32 %v2560_v0, %v5497_v51 }
 0x38b   : > { %v2330_v33 = vpop.f32.mrb[96].mxu1 }
 0x38c   : > { %2614 = vst.msk [vmem:[%s5004_s17 + $0x50] sm:$0xff] %vm5498_vm10, %v2598_v52  ;;  %v2599_v43 = vadd.f32 %v4999_v1, %v2576_v48  ;;  %v2331_v35 = vadd.f32 %v2330_v33, %v4976_v8  ;;  %v2332_v60 = vpop.f32.mrb[97].mxu1 }
 0x38d   : > { %v2333_v26 = vpop.f32.mrb[98].mxu1 }
 0x38e   : > { %2615 = vst.msk [vmem:[%s5004_s17 + $0x58] sm:$0xff] %vm5499_vm13, %v2599_v43  ;;  %v2561_v45 = vadd.f32 %v4986_v38, %v2331_v35  ;;  %v2334_v40 = vadd.f32 %v2333_v26, %v4980_v55  ;;  %v2335_v49 = vpop.f32.mrb[99].mxu1 }
 0x390   : > { %v2577_v39 = vadd.f32 %v2561_v45, %v5500_v63  ;;  %v2562_v18 = vadd.f32 %v4990_v11, %v2334_v40 }
 0x392   : > { %v2600_v9 = vadd.f32 %v4999_v1, %v2577_v39  ;;  %v2578_v8 = vadd.f32 %v2562_v18, %v5501_v17 }
 0x393   : > { %v2338_v29 = vpop.f32.mrb[100].mxu1 }
 0x394   : > { %2616 = vst.msk [vmem:[%s5004_s17 + $0x60] sm:$0xff] %vm5502_vm4, %v2600_v9  ;;  %v2601_v57 = vadd.f32 %v4999_v1, %v2578_v8  ;;  %v2339_v38 = vadd.f32 %v2338_v29, %v4984_v53  ;;  %v2340_v12 = vpop.f32.mrb[101].mxu1  ;;  %v5503_v53 = vld [vmem:[#allocation20_spill] sm:$0xff] }
 0x395   : > { %v2341_v55 = vpop.f32.mrb[102].mxu1 }
 0x396   : > { %2617 = vst.msk [vmem:[%s5004_s17 + $0x68] sm:$0xff] %vm5450_vm0, %v2601_v57  ;;  %v2342_v27 = vadd.f32 %v2341_v55, %v4988_v56  ;;  %v2343_v11 = vpop.f32.mrb[103].mxu1 }
 0x39b   : > { %v2542_v28 = vpop.f32.mrb[104].mxu1 }
 0x39c   : > { %v2563_v2 = vadd.f32 %v2542_v28, %v2339_v38  ;;  %v2544_v32 = vpop.f32.mrb[105].mxu1 }
 0x39d   : > { %v2545_v24 = vpop.f32.mrb[106].mxu1 }
 0x39e   : > { %v2579_v50 = vadd.f32 %v2563_v2, %v5503_v53  ;;  %v2564_v15 = vadd.f32 %v2545_v24, %v2342_v27  ;;  %v2547_v34 = vpop.f32.mrb[107].mxu1 }
 0x3a0   : > { %v2602_v56 = vadd.f32 %v4999_v1, %v2579_v50  ;;  %v2580_v19 = vadd.f32 %v2564_v15, %v5504_v41 }
 0x3a2   : > { %2618 = vst.msk [vmem:[%s5004_s17 + $0x70] sm:$0xff] %vm5505_vm8, %v2602_v56  ;;  %v2603_v22 = vadd.f32 %v4999_v1, %v2580_v19 }
 0x3a4   : > { %2619 = vst.msk [vmem:[%s5004_s17 + $0x78] sm:$0xff] %vm5506_vm2, %v2603_v22 }
 0x3a5   : > { %3176 = shalt.err (!%p3173_p11)
}
 0x3a6   : > { %s3177_s9 = scalar_lea.hbm %s5092_s27, 2048  ;;  %s3181_s17 = scalar_lea.hbm %s5163_s6, 8192 }
 0x3a7   : > { %p3178_p12 = scmp.ne.s32.totalorder %s5092_s27, %s3177_s9  ;;  %p3182_p1 = scmp.lt.u32.totalorder %s5092_s27, %s5163_s6 }
 0x3a8   : > { %p3183_p2 = scmp.lt.u32.totalorder %s3181_s17, %s3177_s9  ;;  %p3185_p5 = scmp.lt.u32.totalorder %s3177_s9, %s5092_s27 }
 0x3a9   : > { %p3179_p13 = pnand %p3178_p12, %p3350_p3 }
 0x3aa   : > { %p3184_p4 = por %p3183_p2, %p3182_p1 }
 0x3ab   : > { %p3180_p0 = pneg %p3179_p13 }
 0x3ac   : > { %p3186_p6 = por %p3185_p5, %p3184_p4 }
 0x3ae   : > { %p3187_p7 = pnand %p3186_p6, %p3180_p0 }
 0x3b0   : > { %3190 = shalt.err (!%p3187_p7)
}
 0x3b1   : > { %s3262_s24 = smov 128   ;;  %s3263_s8 = smov 8  }
 0x3b2   : > { %3013 = dma.vmem_to_hbm [thread:$0]  (%p3350_p3), %s5099_s30, 2048, %s5092_s27, %s5105_s25, %s3262_s24, %s3262_s24, %s3263_s8  }
 0x3b3 PF: > { %p3019_p9 = scmp.ge.s32.totalorder %s3257_s28, 2  ;;  %s2651_s13 = sand.u32 1, %s3229_s21  }
 0x3b4   : > { %s2652_s16 = scalar_lea.sflag [#allocation3], %s2651_s13 }
 0x3b5   : > { %p3016_p10 = pnand %p3019_p9, %p3359_p8 }
 0x3b7   : > { %3224 = dma.done.wait (!%p3016_p10), %s2652_s16, 2048  }
 0x3b8   : > { %3226 = vsyncadd (!%p3016_p10), %s2652_s16, 4294965248  ;;  %s19_s28 = sadd.s32 1, %s3257_s28   ;;  %s5507_s25 = sld [smem:[#allocation5_spill]] }
 0x3b9   : > { %p16_p11 = scmp.ge.s32.totalorder %s19_s28, 6   ;;  %s5508_s10 = sld [smem:[#allocation6_spill]] }
 0x3ba   : > { %s5509_s27 = sld [smem:[#allocation7_spill]]  ;;  %s5510_s21 = smov %s3233_s22 }
 0x3bb   : > { %s5511_s22 = smov %s3237_s23  ;;  %s5512_s23 = smov %s3368_s15 }
 0x3bc   : > { %s5513_s24 = smov %s3249_s26  ;;  %18 = sbr.rel (!%p16_p11) target bundleno = 5 (0x5), region = 86 }
 0x3bf   : > { %s5514_s26 = smov %s5508_s10 }
 0x3c3   :  { %2657 = vsyncpa [#allocation3], 1 }
 0x3c4   :  { %2659 = vsyncpa [#allocation3 + $0x1], 1 }

</bundles_post_ra>
